<compile_context>
chip_gen: v5e
topology: v5e:2x2
jax: 0.10.0
libtpu: 0.0.40
codegen_flags: <defaults>
</compile_context>

<pallas_src>
import math
import functools

import jax
import jax.numpy as jnp
from jax.experimental import pallas as pl
from jax.experimental.pallas import tpu as pltpu


def _upsample_factors(scale):
    """Static list of PixelShuffle factors for a given scale."""
    if scale in (2, 4, 8):
        return (2,) * int(round(math.log2(scale)))
    if scale == 3:
        return (3,)
    raise ValueError(f"unsupported scale {scale}")


def conv3x3_relu_kernel(x_ref, w_ref, b_ref, o_ref, xpad_ref):
    """3x3 SAME conv + bias + ReLU for one image, lane-dense output.

    x_ref:    (1, Cin, H, W)     input image (NCHW block, no pre-transpose)
    w_ref:    (Cout, 9*Cin)      weights, columns ordered (dh, dw, cin)
    b_ref:    (Cout, 1)          bias
    o_ref:    (1, Cout, H*W)     output; last dim (H*W) is lane-dense
    xpad_ref: (Cin, H+2, W+2)    VMEM scratch holding the zero-padded image
    """
    Cin, H, W = x_ref.shape[1], x_ref.shape[2], x_ref.shape[3]
    HW = H * W

    # Zero-pad the 1-pixel halo in VMEM (no wrapper pad / extra HBM pass).
    xpad_ref[...] = jnp.zeros_like(xpad_ref)
    xpad_ref[:, 1:H + 1, 1:W + 1] = x_ref[0]

    # im2col: 9 shifted taps concatenated along the contraction axis,
    # ordered (dh, dw, cin) to match w_ref's column layout.
    patches = []
    for dh in range(3):
        for dw in range(3):
            patches.append(
                xpad_ref[:, dh:dh + H, dw:dw + W].reshape(Cin, HW))
    p = jnp.concatenate(patches, axis=0)               # (9*Cin, H*W)

    # One MXU matmul with K = 9*Cin; result (Cout, H*W) is lane-dense.
    acc = jnp.dot(w_ref[...], p, preferred_element_type=jnp.float32)
    acc = acc + b_ref[...]                             # (Cout, 1) broadcast
    o_ref[0] = jnp.maximum(acc, 0.0).astype(o_ref.dtype)


def conv3x3_relu(x_nchw, w_t, bias):
    """x_nchw: (B, Cin, H, W); w_t: (Cout, 9*Cin); bias: (Cout,).

    Returns (B, Cout, H, W); the trailing reshape from (B, Cout, H*W) is a
    free contiguous reshape (no data movement).
    """
    B, Cin, H, W = x_nchw.shape
    Cout = w_t.shape[0]

    out_flat = pl.pallas_call(
        conv3x3_relu_kernel,
        out_shape=jax.ShapeDtypeStruct((B, Cout, H * W), x_nchw.dtype),
        grid=(B,),
        in_specs=[
            pl.BlockSpec((1, Cin, H, W), lambda b: (b, 0, 0, 0)),
            pl.BlockSpec((Cout, 9 * Cin), lambda b: (0, 0)),
            pl.BlockSpec((Cout, 1), lambda b: (0, 0)),
        ],
        out_specs=pl.BlockSpec((1, Cout, H * W), lambda b: (b, 0, 0)),
        scratch_shapes=[pltpu.VMEM((Cin, H + 2, W + 2), x_nchw.dtype)],
        compiler_params=pltpu.CompilerParams(
            dimension_semantics=("parallel",)),
    )(x_nchw, w_t, bias.reshape(Cout, 1))

    return out_flat.reshape(B, Cout, H, W)


def pixel_shuffle(x, r):
    """PyTorch nn.PixelShuffle: (B, C*r*r, H, W) -> (B, C, H*r, W*r)."""
    B, C, H, W = x.shape
    Co = C // (r * r)
    x = x.reshape(B, Co, r, r, H, W)
    x = jnp.transpose(x, (0, 1, 4, 2, 5, 3))
    return x.reshape(B, Co, H * r, W * r)


def init_upsample_params(key, n_channels, scale, dtype=jnp.float32):
    """Deterministic params matching the module's layer shapes.

    Returns a list of (w_t, w_oihw, b) per conv layer; every leaf is an
    array, so the pytree is safe to pass through jit.
    """
    params = []
    for r in _upsample_factors(scale):
        cout = (r * r) * n_channels
        key, kw, kb = jax.random.split(key, 3)
        fan_in = n_channels * 9
        bound = 1.0 / math.sqrt(fan_in)
        # PyTorch Conv2d weight layout is OIHW.
        w_oihw = jax.random.uniform(kw, (cout, n_channels, 3, 3),
                                    dtype, -bound, bound)
        b = jax.random.uniform(kb, (cout,), dtype, -bound, bound)
        # Kernel layout: (Cout, 9*Cin), columns ordered (dh, dw, cin).
        w_t = jnp.transpose(w_oihw, (0, 2, 3, 1)).reshape(
            cout, 9 * n_channels)
        params.append((w_t, w_oihw, b))
    return params


@functools.partial(jax.jit, static_argnums=(2,))
def upsample_block(x, params, scale):
    factors = _upsample_factors(scale)   # static: derived from static scale
    for (w_t, _w_oihw, b), r in zip(params, factors):
        y = conv3x3_relu(x, w_t, b)
        x = pixel_shuffle(y, r)
    return x


def upsample_block_ref(x, params, scale):
    """Pure-JAX reference (lax conv) for correctness check."""
    for (_w_t, w_oihw, b), r in zip(params, _upsample_factors(scale)):
        y = jax.lax.conv_general_dilated(
            x, w_oihw, window_strides=(1, 1), padding="SAME",
            dimension_numbers=("NCHW", "OIHW", "NCHW"))
        y = jnp.maximum(y + b[None, :, None, None], 0.0)
        x = pixel_shuffle(y, r)
    return x


if __name__ == "__main__":
    key = jax.random.PRNGKey(0)
    k_x, k_p = jax.random.split(key)

    B, C, H, W = 2, 4, 16, 16
    x = jax.random.normal(k_x, (B, C, H, W), jnp.float32)

    for scale in (2, 4):
        params = init_upsample_params(k_p, C, scale)

        out = jax.block_until_ready(upsample_block(x, params, scale))
        assert out.shape == (B, C, H * scale, W * scale), out.shape

        ref = upsample_block_ref(x, params, scale)
        max_err = float(jnp.max(jnp.abs(out - ref)))
        assert jnp.allclose(out, ref, rtol=1e-4, atol=1e-4), max_err

    print("KERNEL_OK")
</pallas_src>

<mosaic_0001>
module attributes {stable_mosaic.version = 11 : i64} {
  func.func @conv3x3_relu_kernel(%arg0: i32, %arg1: memref<1x4x16x16xf32, #tpu.memory_space<vmem>>, %arg2: memref<16x36xf32, #tpu.memory_space<vmem>>, %arg3: memref<16x1xf32, #tpu.memory_space<vmem>>, %arg4: memref<1x16x256xf32, #tpu.memory_space<vmem>>, %arg5: memref<4x18x18xf32, #tpu.memory_space<vmem>>) attributes {dimension_semantics = [#tpu.dimension_semantics<parallel>], iteration_bounds = array<i64: 2>, scalar_prefetch = 0 : i64, scratch_operands = 1 : i64, tpu.core_type = #tpu.core_type<tc>, window_params = [{transform_indices = @transform_0, window_bounds = array<i64: 1, 4, 16, 16>}, {pipeline_mode = #tpu.pipeline_mode<synchronous>, transform_indices = @transform_1, window_bounds = array<i64: 16, 36>}, {pipeline_mode = #tpu.pipeline_mode<synchronous>, transform_indices = @transform_2, window_bounds = array<i64: 16, 1>}, {transform_indices = @transform_3, window_bounds = array<i64: 1, 16, 256>}]} {
    %cst = arith.constant 0.000000e+00 : f32
    %0 = vector.broadcast %cst : f32 to vector<4x18x18xf32>
    %c0 = arith.constant 0 : index
    %c0_0 = arith.constant 0 : index
    %c0_1 = arith.constant 0 : index
    %1 = vector.load %arg5[%c0, %c0_0, %c0_1] : memref<4x18x18xf32, #tpu.memory_space<vmem>>, vector<4x18x18xf32>
    tpu.vector_store %arg5[%c0, %c0_0, %c0_1], %0 {strides = array<i32>} : memref<4x18x18xf32, #tpu.memory_space<vmem>>, vector<4x18x18xf32>,
    %c0_2 = arith.constant 0 : index
    %c0_3 = arith.constant 0 : index
    %c0_4 = arith.constant 0 : index
    %c0_5 = arith.constant 0 : index
    %2 = vector.load %arg1[%c0_2, %c0_3, %c0_4, %c0_5] : memref<1x4x16x16xf32, #tpu.memory_space<vmem>>, vector<1x4x16x16xf32>
    %3 = vector.shape_cast %2 : vector<1x4x16x16xf32> to vector<4x16x16xf32>
    %c0_6 = arith.constant 0 : index
    %c1 = arith.constant 1 : index
    %c1_7 = arith.constant 1 : index
    %4 = vector.load %arg5[%c0_6, %c1, %c1_7] : memref<4x18x18xf32, #tpu.memory_space<vmem>>, vector<4x16x16xf32>
    tpu.vector_store %arg5[%c0_6, %c1, %c1_7], %3 {strides = array<i32>} : memref<4x18x18xf32, #tpu.memory_space<vmem>>, vector<4x16x16xf32>,
    %c0_8 = arith.constant 0 : index
    %c0_9 = arith.constant 0 : index
    %c0_10 = arith.constant 0 : index
    %5 = vector.load %arg5[%c0_8, %c0_9, %c0_10] : memref<4x18x18xf32, #tpu.memory_space<vmem>>, vector<4x16x16xf32>
    %6 = vector.shape_cast %5 : vector<4x16x16xf32> to vector<4x256xf32>
    %c0_11 = arith.constant 0 : index
    %c0_12 = arith.constant 0 : index
    %c1_13 = arith.constant 1 : index
    %7 = vector.load %arg5[%c0_11, %c0_12, %c1_13] : memref<4x18x18xf32, #tpu.memory_space<vmem>>, vector<4x16x16xf32>
    %8 = vector.shape_cast %7 : vector<4x16x16xf32> to vector<4x256xf32>
    %c0_14 = arith.constant 0 : index
    %c0_15 = arith.constant 0 : index
    %c2 = arith.constant 2 : index
    %9 = vector.load %arg5[%c0_14, %c0_15, %c2] : memref<4x18x18xf32, #tpu.memory_space<vmem>>, vector<4x16x16xf32>
    %10 = vector.shape_cast %9 : vector<4x16x16xf32> to vector<4x256xf32>
    %c0_16 = arith.constant 0 : index
    %c1_17 = arith.constant 1 : index
    %c0_18 = arith.constant 0 : index
    %11 = vector.load %arg5[%c0_16, %c1_17, %c0_18] : memref<4x18x18xf32, #tpu.memory_space<vmem>>, vector<4x16x16xf32>
    %12 = vector.shape_cast %11 : vector<4x16x16xf32> to vector<4x256xf32>
    %c0_19 = arith.constant 0 : index
    %c1_20 = arith.constant 1 : index
    %c1_21 = arith.constant 1 : index
    %13 = vector.load %arg5[%c0_19, %c1_20, %c1_21] : memref<4x18x18xf32, #tpu.memory_space<vmem>>, vector<4x16x16xf32>
    %14 = vector.shape_cast %13 : vector<4x16x16xf32> to vector<4x256xf32>
    %c0_22 = arith.constant 0 : index
    %c1_23 = arith.constant 1 : index
    %c2_24 = arith.constant 2 : index
    %15 = vector.load %arg5[%c0_22, %c1_23, %c2_24] : memref<4x18x18xf32, #tpu.memory_space<vmem>>, vector<4x16x16xf32>
    %16 = vector.shape_cast %15 : vector<4x16x16xf32> to vector<4x256xf32>
    %c0_25 = arith.constant 0 : index
    %c2_26 = arith.constant 2 : index
    %c0_27 = arith.constant 0 : index
    %17 = vector.load %arg5[%c0_25, %c2_26, %c0_27] : memref<4x18x18xf32, #tpu.memory_space<vmem>>, vector<4x16x16xf32>
    %18 = vector.shape_cast %17 : vector<4x16x16xf32> to vector<4x256xf32>
    %c0_28 = arith.constant 0 : index
    %c2_29 = arith.constant 2 : index
    %c1_30 = arith.constant 1 : index
    %19 = vector.load %arg5[%c0_28, %c2_29, %c1_30] : memref<4x18x18xf32, #tpu.memory_space<vmem>>, vector<4x16x16xf32>
    %20 = vector.shape_cast %19 : vector<4x16x16xf32> to vector<4x256xf32>
    %c0_31 = arith.constant 0 : index
    %c2_32 = arith.constant 2 : index
    %c2_33 = arith.constant 2 : index
    %21 = vector.load %arg5[%c0_31, %c2_32, %c2_33] : memref<4x18x18xf32, #tpu.memory_space<vmem>>, vector<4x16x16xf32>
    %22 = vector.shape_cast %21 : vector<4x16x16xf32> to vector<4x256xf32>
    %23 = tpu.concatenate %6, %8, %10, %12, %14, %16, %18, %20, %22 in 0 : vector<4x256xf32>, vector<4x256xf32>, vector<4x256xf32>, vector<4x256xf32>, vector<4x256xf32>, vector<4x256xf32>, vector<4x256xf32>, vector<4x256xf32>, vector<4x256xf32> -> vector<36x256xf32>
    %c0_34 = arith.constant 0 : index
    %c0_35 = arith.constant 0 : index
    %24 = vector.load %arg2[%c0_34, %c0_35] : memref<16x36xf32, #tpu.memory_space<vmem>>, vector<16x36xf32>
    %cst_36 = arith.constant dense<0.000000e+00> : vector<16x256xf32>
    %25 = tpu.matmul %24, %23, %cst_36 {dimension_numbers = #tpu.dot_dimension_numbers<[1], [0], [0], [1], [0, 0, 1, 1], [], []>} : vector<16x36xf32>, vector<36x256xf32>, vector<16x256xf32> -> vector<16x256xf32>
    %c0_37 = arith.constant 0 : index
    %c0_38 = arith.constant 0 : index
    %26 = vector.load %arg3[%c0_37, %c0_38] : memref<16x1xf32, #tpu.memory_space<vmem>>, vector<16x1xf32>
    %27 = vector.broadcast %26 : vector<16x1xf32> to vector<16x256xf32>
    %28 = arith.addf %25, %27 : vector<16x256xf32>
    %cst_39 = arith.constant 0.000000e+00 : f32
    %29 = vector.broadcast %cst_39 : f32 to vector<16x256xf32>
    %30 = arith.maximumf %28, %29 : vector<16x256xf32>
    %c0_40 = arith.constant 0 : index
    %c0_41 = arith.constant 0 : index
    %c0_42 = arith.constant 0 : index
    %31 = vector.load %arg4[%c0_40, %c0_41, %c0_42] : memref<1x16x256xf32, #tpu.memory_space<vmem>>, vector<1x16x256xf32>
    %32 = vector.shape_cast %31 : vector<1x16x256xf32> to vector<16x256xf32>
    %33 = vector.shape_cast %30 : vector<16x256xf32> to vector<1x16x256xf32>
    tpu.vector_store %arg4[%c0_40, %c0_41, %c0_42], %33 {strides = array<i32>} : memref<1x16x256xf32, #tpu.memory_space<vmem>>, vector<1x16x256xf32>,
    return
  }
  func.func @transform_0(%arg0: i32) -> (i32, i32, i32, i32) {
    %c0_i32 = arith.constant 0 : i32
    %c0_i32_0 = arith.constant 0 : i32
    %c0_i32_1 = arith.constant 0 : i32
    %c0_i32_2 = arith.constant 0 : i32
    return %arg0, %c0_i32, %c0_i32_0, %c0_i32_1 : i32, i32, i32, i32
  }
  func.func @transform_1(%arg0: i32) -> (i32, i32) {
    %c0_i32 = arith.constant 0 : i32
    %c0_i32_0 = arith.constant 0 : i32
    %c0_i32_1 = arith.constant 0 : i32
    return %c0_i32, %c0_i32_0 : i32, i32
  }
  func.func @transform_2(%arg0: i32) -> (i32, i32) {
    %c0_i32 = arith.constant 0 : i32
    %c0_i32_0 = arith.constant 0 : i32
    %c0_i32_1 = arith.constant 0 : i32
    return %c0_i32, %c0_i32_0 : i32, i32
  }
  func.func @transform_3(%arg0: i32) -> (i32, i32, i32) {
    %c0_i32 = arith.constant 0 : i32
    %c0_i32_0 = arith.constant 0 : i32
    %c0_i32_1 = arith.constant 0 : i32
    return %arg0, %c0_i32, %c0_i32_0 : i32, i32, i32
  }
}

</mosaic_0001>

<bundles_post_ra>
// kernel: upsample_block.1
= control target key start
LH: loop header
LB: loop body
LE: loop exit
PB: predicated region body
PF: predicated region fallthrough
CT: control target
= control target key end

     0   :  { %8 = vsyncpa [#allocation4], 0  ;;  %s4655_s0 = inlined_call_operand.hbm [shape: f32[2,4,16,16], index: 0, kind: input, shape index: {}]   ;;  %s4656_s1 = inlined_call_operand.vmem [shape: f32[16,36], index: 1, kind: input, shape index: {}]   ;;  %s4657_s2 = inlined_call_operand.vmem [shape: f32[16,1], index: 2, kind: input, shape index: {}]   ;;  %s4658_s3 = inlined_call_operand.vmem [shape: f32[2,16,256], index: 3, kind: output, shape index: {}]  }
   0x1   :  { %10 = vsyncpa [#allocation4 + $0x1], 0  ;;  %s2845_s12 = smov 0   ;;  %s2847_s13 = smov 0  }
   0x2   :  { %s2849_s14 = smov 0   ;;  %s2851_s15 = smov 0  }
   0x3 LB: > { %s2864_s16 = sadd.s32 4294967295, %s2807_s15   ;;  %s2867_s17 = sadd.s32 1, %s2807_s15   ;;  %s2807_s15 = sphi %s2851_s15, %s4793_s15   ;;  %s2803_s14 = sphi %s2849_s14, %s4792_s14   ;;  %s2799_s13 = sphi %s2847_s13, %s4791_s13   ;;  %s2795_s12 = sphi %s2845_s12, %s4790_s12  }
   0x4   : > { %s20_s18 = ssub.s32 %s2807_s15, %s2867_s17  ;;  %s23_s19 = sadd.s32 1, %s2803_s14 }
   0x5   : > { %p21_p0 = scmp.eq.s32.totalorder %s20_s18, 0  ;;  %p30_p1 = scmp.ne.s32.totalorder %s2803_s14, %s2799_s13 }
   0x6   : > { %p31_p2 = scmp.eq.s32.totalorder %s2807_s15, 0  ;;  %p36_p3 = scmp.ne.s32.totalorder %s2799_s13, %s2795_s12 }
   0x7   : > { %s2877_s20 = scalar_select %p21_p0, %s2803_s14, %s23_s19  }
   0x8   : > { %p2879_p4 = por %p31_p2, %p30_p1  ;;  %p37_p5 = scmp.eq.s32.totalorder %s2864_s16, 0 }
   0x9   : > { %p2311_p6 = scmp.lt.s32.totalorder %s2807_s15, 2  ;;  %s134_s23 = sand.u32 1, %s2803_s14  }
   0xa   : > { %p2885_p7 = por %p37_p5, %p36_p3  ;;  %s2278_s24 = sshll.u32 %s134_s23, 6 }
   0xb   : > { %s2293_s25 = sshll.u32 %s2807_s15, 6  ;;  %s138_s29 = scalar_lea.vmem [#allocation3], %s2278_s24 }
   0xc   : > { %s143_s28 = scalar_lea.hbm %s4655_s0, %s2293_s25  ;;  %s146_s30 = sshll.u32 %s138_s29, 4  ;;  %s147_s30 = int_to_ptr.vmem [resolvable:$true] %s146_s30 }
   0xd   : > { %s144_s4 = sshll.u32 %s143_s28, 4  ;;  %p2896_p8 = pnand %p2311_p6, %p2879_p4  ;;  %s145_s4 = int_to_ptr.hbm [resolvable:$true] %s144_s4 }
   0xe   : > { %p2281_p9 = scmp.ge.s32.totalorder %s2807_s15, 1  ;;  %s135_s6 = scalar_lea.sflag [#allocation4], %s134_s23 }
   0xf   : > { %s2743_s7 = sshra.s32 %s145_s4, 4  ;;  %p2747_p11 = pneg %p2896_p8  ;;  %s2744_s7 = int_to_ptr.hbm [resolvable:$true] %s2743_s7 }
  0x10   : > { %s2745_s8 = scalar_lea.hbm %s2744_s7, 64  ;;  %s2750_s11 = scalar_lea.hbm %s4655_s0, 128 }
  0x11   : > { %p2746_p10 = scmp.ne.s32.totalorder %s2744_s7, %s2745_s8  ;;  %p2751_p0 = scmp.lt.s32.totalorder %s2744_s7, %s4655_s0 }
  0x12   : > { %p2752_p1 = scmp.lt.s32.totalorder %s2750_s11, %s2745_s8 }
  0x13   : > { %p2748_p12 = pnand %p2747_p11, %p2746_p10 }
  0x14   : > { %p2753_p2 = por %p2752_p1, %p2751_p0 }
  0x15   : > { %p2749_p13 = pneg %p2748_p12 }
  0x17   : > { %p2754_p3 = pnand %p2753_p2, %p2749_p13 }
  0x19   : > { %2757 = shalt.err (!%p2754_p3)
}
  0x1a   : > { %s2809_s19 = smov 128   ;;  %s2810_s21 = smov 8  }
  0x1b   : > { %2310 = dma.hbm_to_vmem [thread:$0]  (!%p2896_p8), %s145_s4, 1024, %s147_s30, %s135_s6, %s2809_s19, %s2809_s19, %s2810_s21  }
  0x1c   : > { %p154_p4 = scmp.lt.s32.totalorder %s2807_s15, 3 }
  0x1e   : > { %p155_p5 = pnand %p2281_p9, %p154_p4 }
  0x20   : > { %158 = sbr.rel (%p155_p5) target bundleno = 736 (0x2e0), region = 32 }
  0x25   : > { %s160_s23 = sand.u32 1, %s2799_s13  }
  0x26   : > { %s2282_s24 = sshll.u32 %s160_s23, 6  ;;  %s161_s25 = scalar_lea.sflag [#allocation4], %s160_s23 }
  0x27   : > { %s164_s26 = scalar_lea.vmem [#allocation3], %s2282_s24 }
  0x28   : > { %2790 = dma.done.wait (%p2885_p7), %s161_s25, 1024  }
  0x29   : > { %2792 = vsyncadd (%p2885_p7), %s161_s25, 4294966272  ;;  %vm193_vm0 = vcmask 146432   ;;  %v2811_v0 = vmov 0.0   ;;  %v209_v1 = vld [vmem:[%s164_s26 + $0x10] sm:$0xff]  ;;  %v207_v2 = vld [vmem:[%s164_s26] sm:$0xff]  ;;  %s2812_s15 = smov 1  }
  0x2a   : > { %201 = vst.msk [vmem:[#allocation2 + $0x30] sm:$0xff] %vm193_vm0, %v2811_v0  ;;  %227 = vrot.lane.b32.xlu1 %v209_v1, %s2812_s15  ;;  %223 = vrot.lane.b32.xlu0 %v207_v2, %s2812_s15  ;;  %v211_v3 = vld [vmem:[%s164_s26 + $0x20] sm:$0xff]  ;;  %v210_v4 = vld [vmem:[%s164_s26 + $0x18] sm:$0xff]  ;;  %vm196_vm1 = vcmask 140288   ;;  %vm247_vm2 = vcmask 138248   ;;  %s2813_s22 = smov 127  }
  0x2b   : > { %202 = vst.msk [vmem:[#allocation2 + $0x38] sm:$0xff] %vm193_vm0, %v2811_v0  ;;  %231 = vrot.lane.b32.xlu2 %v211_v3, %s2812_s15  ;;  %v208_v5 = vld [vmem:[%s164_s26 + $0x8] sm:$0xff]  ;;  %v214_v7 = vld [vmem:[%s164_s26 + $0x38] sm:$0xff]  ;;  %v213_v8 = vld [vmem:[%s164_s26 + $0x30] sm:$0xff]  ;;  %vm265_vm3 = vcmask 1047556   ;;  %s2815_s27 = smov 126  }
  0x2c   : > { %194 = vst.msk [vmem:[#allocation2] sm:$0xff] %vm193_vm0, %v2811_v0  ;;  %v212_v6 = vld [vmem:[%s164_s26 + $0x28] sm:$0xff]  ;;  %v2814_v28 = vmov 1983009808   ;;  %v2816_v42 = vmov 1934713408  }
  0x2d   : > { %195 = vst.msk [vmem:[#allocation2 + $0x8] sm:$0xff] %vm193_vm0, %v2811_v0  ;;  %v270_v29 = vunpack.c.l.s4 %v2814_v28  ;;  %v294_v43 = vunpack.c.l.s4 %v2816_v42  ;;  %s2817_s28 = smov 96   ;;  %s2818_s29 = smov 64   ;;  %vm433_vm4 = vcmask 130048   ;;  %vm435_vm5 = vcmask 261120  }
  0x2e   : > { %198 = vst.msk [vmem:[#allocation2 + $0x18] sm:$0xff] %vm193_vm0, %v2811_v0  ;;  %s2819_s30 = smov 32   ;;  %s2820_s4 = smov 16   ;;  %vm437_vm6 = vcmask 392192   ;;  %vm439_vm7 = vcmask 523264   ;;  %vm441_vm8 = vcmask 654336  }
  0x2f   : > { %199 = vst.msk [vmem:[#allocation2 + $0x20] sm:$0xff] %vm193_vm0, %v2811_v0  ;;  %v2936_v34 = vunpack.c.0.s8 %v270_v29  ;;  %v2950_v52 = vunpack.c.0.s8 %v294_v43  ;;  %s2821_s5 = smov 48   ;;  %s2822_s6 = smov 112   ;;  %vm443_vm9 = vcmask 785408   ;;  %vm445_vm10 = vcmask 916480  }
  0x30   : > { %204 = vst.msk [vmem:[#allocation2 + $0x48] sm:$0xff] %vm193_vm0, %v2811_v0  ;;  %s2823_s7 = smov 80   ;;  %vm2118_vm11 = vcmask 1043456   ;;  %vm2141_vm12 = vcmask 293888   ;;  %p188_p6 = scmp.lt.s32.totalorder %s2864_s16, 1 }
  0x31   : > { %205 = vst.msk [vmem:[#allocation2 + $0x50] sm:$0xff] %vm193_vm0, %v2811_v0 }
  0x32   : > { %229 = vrot.lane.b32.xlu1 %v210_v4, %s2812_s15  ;;  %225 = vrot.lane.b32.xlu0 %v208_v5, %s2812_s15  ;;  %203 = vst.msk [vmem:[#allocation2 + $0x40] sm:$0x3] %vm196_vm1, %v2811_v0  ;;  %s4795_s16 = smov (!%p188_p6, %s2864_s16), 1 }
  0x33   : > { %233 = vrot.lane.b32.xlu2 %v212_v6, %s2812_s15  ;;  %197 = vst.msk [vmem:[#allocation2 + $0x10] sm:$0x3] %vm196_vm1, %v2811_v0  ;;  %s2294_s23 = sshll.u32 %s4795_s16, 5 }
  0x34   : > { %200 = vst.msk [vmem:[#allocation2 + $0x28] sm:$0x3] %vm196_vm1, %v2811_v0  ;;  %s192_s26 = scalar_lea.vmem %s4658_s3, %s2294_s23 }
  0x35   : > { %206 = vst.msk [vmem:[#allocation2 + $0x58] sm:$0x3] %vm196_vm1, %v2811_v0 }
  0x3a   : > { %237 = vrot.lane.b32.xlu1 %v214_v7, %s2812_s15  ;;  %235 = vrot.lane.b32.xlu0 %v213_v8, %s2812_s15 }
  0x85   : > { %v232_v9 = vpop.permute.xlu2 %231 }
  0x86   : > { %252 = vst.msk [vmem:[#allocation2 + $0x31] sm:$0xff] %vm247_vm2, %v232_v9 }
  0x8d   : > { %v234_v10 = vpop.permute.xlu2 %233  ;;  %v260_v11 = vld [vmem:[#allocation2 + $0x30] sm:$0xff] }
  0x8e   : > { %253 = vst.msk [vmem:[#allocation2 + $0x39] sm:$0xff] %vm247_vm2, %v234_v10  ;;  %v264_v16 = vrot.slane %v260_v11, 4  ;;  %v2953_v55 = vld [vmem:[#allocation2 + $0x31] sm:$0xff] }
  0x95   : > { %v261_v12 = vld [vmem:[#allocation2 + $0x38] sm:$0xff] }
  0x96   : > { %v2370_v13 = vpack.i.bf16 %v261_v12, %v260_v11  ;;  %v321_v21 = vrot.slane %v261_v12, 4  ;;  %v2947_v51 = vld [vmem:[#allocation2 + $0x39] sm:$0xff] }
  0x97   : > { %v2959_v59 = vpack.i.bf16 %v2947_v51, %v2953_v55 }
  0x98   : > { %2371 = vrot.lane.b32.xlu2 %v2370_v13, %s2813_s22 }
  0x9c   : > { %v228_v14 = vpop.permute.xlu1 %227  ;;  %v224_v15 = vpop.permute.xlu0 %223 }
  0x9d   : > { %250 = vst.msk [vmem:[#allocation2 + $0x19] sm:$0xff] %vm247_vm2, %v228_v14 }
  0x9e   : > { %248 = vst.msk [vmem:[#allocation2 + $0x1] sm:$0xff] %vm247_vm2, %v224_v15 }
  0xa4   : > { %v230_v17 = vpop.permute.xlu1 %229  ;;  %v226_v18 = vpop.permute.xlu0 %225  ;;  %v258_v24 = vld [vmem:[#allocation2 + $0x18] sm:$0xff] }
  0xa5   : > { %251 = vst.msk [vmem:[#allocation2 + $0x21] sm:$0xff] %vm247_vm2, %v230_v17  ;;  %v256_v19 = vld [vmem:[#allocation2] sm:$0xff]  ;;  %v279_v38 = vrot.slane %v258_v24, 4 }
  0xa6   : > { %249 = vst.msk [vmem:[#allocation2 + $0x9] sm:$0xff] %vm247_vm2, %v226_v18  ;;  %v266_v20 = vsel %vm265_vm3, %v264_v16, %v256_v19  ;;  %v267_v32 = vrot.slane %v256_v19, 4  ;;  %v2967_v4 = vld [vmem:[#allocation2 + $0x1] sm:$0xff] }
  0xa7   : > { %v272_v44 = vperm.slane %v266_v20, %v2936_v34 }
  0xa8   : > { %v268_v35 = vsel %vm265_vm3, %v260_v11, %v267_v32 }
  0xa9   : > { %v276_v41 = vperm.slane %v268_v35, %v2936_v34  ;;  %v291_v62 = vrot.slane %v272_v44, 4 }
  0xab   : > { %v303_v53 = vrot.slane %v276_v41, 4 }
  0xac   : > { %v238_v22 = vpop.permute.xlu1 %237  ;;  %v236_v23 = vpop.permute.xlu0 %235  ;;  %v259_v25 = vld [vmem:[#allocation2 + $0x20] sm:$0xff] }
  0xad   : > { %255 = vst.msk [vmem:[#allocation2 + $0x51] sm:$0xff] %vm247_vm2, %v238_v22  ;;  %v2928_v26 = vpack.i.bf16 %v259_v25, %v258_v24  ;;  %v257_v27 = vld [vmem:[#allocation2 + $0x8] sm:$0xff]  ;;  %v335_v37 = vrot.slane %v259_v25, 4 }
  0xae   : > { %254 = vst.msk [vmem:[#allocation2 + $0x49] sm:$0xff] %vm247_vm2, %v236_v23  ;;  %v322_v30 = vsel %vm265_vm3, %v321_v21, %v257_v27  ;;  %v2380_v31 = vpack.i.bf16 %v257_v27, %v256_v19  ;;  %v323_v33 = vrot.slane %v257_v27, 4  ;;  %v2961_v60 = vld [vmem:[#allocation2 + $0x9] sm:$0xff]  ;;  %v3014_v27 = vld [vmem:[#allocation2 + $0x19] sm:$0xff] }
  0xaf   : > { %2366 = vrot.lane.b32.xlu1 %v2928_v26, %s2813_s22  ;;  %v328_v54 = vperm.slane %v322_v30, %v2936_v34  ;;  %v2400_v9 = vpack.i.bf16 %v2961_v60, %v2967_v4 }
  0xb0   : > { %2381 = vrot.lane.b32.xlu2 %v2380_v31, %s2815_s27  ;;  %2361 = vrot.lane.b32.xlu0 %v2380_v31, %s2813_s22  ;;  %v324_v36 = vsel %vm265_vm3, %v261_v12, %v323_v33 }
  0xb1   : > { %v332_v47 = vperm.slane %v324_v36, %v2936_v34  ;;  %v347_v12 = vrot.slane %v328_v54, 4 }
  0xb3   : > { %v359_v58 = vrot.slane %v332_v47, 4 }
  0xb4   : > { %v3006_v22 = vld [vmem:[#allocation2 + $0x51] sm:$0xff] }
  0xb5   : > { %v262_v39 = vld [vmem:[#allocation2 + $0x48] sm:$0xff]  ;;  %v263_v40 = vld [vmem:[#allocation2 + $0x50] sm:$0xff] }
  0xb6   : > { %v333_v45 = vrot.slane %v263_v40, 4  ;;  %v2395_v46 = vpack.i.bf16 %v263_v40, %v262_v39  ;;  %v277_v48 = vrot.slane %v262_v39, 4  ;;  %v280_v49 = vsel %vm265_vm3, %v262_v39, %v279_v38  ;;  %v3004_v21 = vld [vmem:[#allocation2 + $0x49] sm:$0xff]  ;;  %v3026_v32 = vld [vmem:[#allocation2 + $0x52] sm:$0xff] }
  0xb7   : > { %2391 = vrot.lane.b32.xlu1 %v2370_v13, %s2815_s27  ;;  %v336_v50 = vsel %vm265_vm3, %v263_v40, %v335_v37  ;;  %v288_v56 = vperm.slane %v280_v49, %v2936_v34  ;;  %v3024_v31 = vld [vmem:[#allocation2 + $0x4a] sm:$0xff]  ;;  %v2425_v38 = vpack.i.bf16 %v3004_v21, %v3014_v27  ;;  %v3061_v49 = vld [vmem:[#allocation2 + $0x1a] sm:$0xff] }
  0xb8   : > { %2396 = vrot.lane.b32.xlu2 %v2395_v46, %s2815_s27  ;;  %2376 = vrot.lane.b32.xlu0 %v2395_v46, %s2813_s22  ;;  %v344_v57 = vperm.slane %v336_v50, %v2936_v34  ;;  %v278_v61 = vsel %vm265_vm3, %v277_v48, %v258_v24  ;;  %v334_v63 = vsel %vm265_vm3, %v333_v45, %v259_v25  ;;  %v3010_v24 = vld [vmem:[#allocation2 + $0x21] sm:$0xff] }
  0xb9   : > { %v304_v0 = vsel %vm265_vm3, %v288_v56, %v303_v53  ;;  %v301_v2 = vrot.slane %v288_v56, 4  ;;  %v284_v7 = vperm.slane %v278_v61, %v2936_v34  ;;  %v340_v8 = vperm.slane %v334_v63, %v2936_v34  ;;  %v3063_v50 = vld [vmem:[#allocation2 + $0x22] sm:$0xff] }
  0xba   : > { %v360_v1 = vsel %vm265_vm3, %v344_v57, %v359_v58  ;;  %v357_v3 = vrot.slane %v344_v57, 4  ;;  %v2970_v5 = vperm.slane %v304_v0, %v2950_v52  ;;  %v2405_v28 = vpack.i.bf16 %v3010_v24, %v3014_v27  ;;  %v3075_v58 = vld [vmem:[#allocation2 + $0xa] sm:$0xff]  ;;  %v3077_v61 = vld [vmem:[#allocation2 + $0x2] sm:$0xff] }
  0xbb   : > { %v2973_v6 = vperm.slane %v360_v1, %v2950_v52  ;;  %v302_v10 = vsel %vm265_vm3, %v301_v2, %v276_v41  ;;  %v292_v16 = vsel %vm265_vm3, %v284_v7, %v291_v62  ;;  %v348_v17 = vsel %vm265_vm3, %v340_v8, %v347_v12  ;;  %v3087_v1 = vld [vmem:[#allocation2 + $0x32] sm:$0xff]  ;;  %v3089_v2 = vld [vmem:[#allocation2 + $0x3a] sm:$0xff] }
  0xbc   : > { %v358_v11 = vsel %vm265_vm3, %v357_v3, %v332_v47  ;;  %v2986_v14 = vperm.slane %v302_v10, %v2950_v52  ;;  %v2999_v19 = vperm.slane %v292_v16, %v2950_v52  ;;  %v3002_v20 = vperm.slane %v348_v17, %v2950_v52 }
  0xbd   : > { %v2470_v13 = vpack.i.bf16 %v2973_v6, %v2970_v5  ;;  %v2989_v15 = vperm.slane %v358_v11, %v2950_v52  ;;  %v289_v25 = vrot.slane %v284_v7, 4  ;;  %v345_v29 = vrot.slane %v340_v8, 4 }
  0xbe   : > { %v2460_v23 = vpack.i.bf16 %v3002_v20, %v2999_v19  ;;  %v317_v35 = vrot.slane %v2986_v14, 4  ;;  %v315_v37 = vrot.slane %v2999_v19, 4  ;;  %v371_v39 = vrot.slane %v3002_v20, 4 }
  0xbf   : > { %2411 = vrot.lane.b32.xlu1 %v2959_v59, %s2813_s22  ;;  %v2465_v18 = vpack.i.bf16 %v2989_v15, %v2986_v14  ;;  %v3022_v30 = vsel %vm265_vm3, %v289_v25, %v272_v44  ;;  %v3029_v33 = vsel %vm265_vm3, %v345_v29, %v328_v54  ;;  %v373_v36 = vrot.slane %v2989_v15, 4 }
  0xc0   : > { %2401 = vrot.lane.b32.xlu2 %v2400_v9, %s2813_s22  ;;  %2386 = vrot.lane.b32.xlu0 %v2928_v26, %s2815_s27  ;;  %v2415_v26 = vpack.i.bf16 %v3006_v22, %v3004_v21  ;;  %v2430_v40 = vpack.i.bf16 %v3026_v32, %v3024_v31  ;;  %v3042_v41 = vsel %vm265_vm3, 0.0, %v317_v35  ;;  %v3048_v43 = vsel %vm265_vm3, 0.0, %v315_v37 }
  0xc1   : > { %v3045_v42 = vsel %vm265_vm3, 0.0, %v373_v36  ;;  %v3054_v45 = vsel %vm265_vm3, 0.0, %v371_v39  ;;  %v319_v46 = vrot.slane %v2970_v5, 4  ;;  %v375_v48 = vrot.slane %v2973_v6, 4 }
  0xc2   : > { %v2510_v44 = vpack.i.bf16 %v3045_v42, %v3042_v41  ;;  %v2505_v47 = vpack.i.bf16 %v3054_v45, %v3048_v43  ;;  %v2440_v57 = vpack.i.bf16 %v3063_v50, %v3061_v49  ;;  %v2435_v62 = vpack.i.bf16 %v3010_v24, %v3006_v22 }
  0xc3   : > { %v3066_v53 = vsel %vm265_vm3, 0.0, %v319_v46  ;;  %v3069_v54 = vsel %vm265_vm3, 0.0, %v375_v48  ;;  %v1550_v63 = vrot.slane %v3075_v58, 4  ;;  %v1494_v0 = vrot.slane %v3077_v61, 4 }
  0xc4   : > { %v2515_v56 = vpack.i.bf16 %v3069_v54, %v3066_v53  ;;  %v1506_v3 = vrot.slane %v3061_v49, 4  ;;  %v1562_v7 = vrot.slane %v3063_v50, 4  ;;  %v2445_v11 = vpack.i.bf16 %v3089_v2, %v3087_v1 }
  0xc5   : > { %v1551_v8 = vsel %vm265_vm3, %v3089_v2, %v1550_v63  ;;  %v882_v48 = vrot.slane %v2953_v55, 4  ;;  %v884_v63 = vrot.slane %v2967_v4, 4  ;;  %v3255_v20 = vperm.slane %v3022_v30, %v2950_v52 }
  0xc6   : > { %v1507_v10 = vsel %vm265_vm3, %v3024_v31, %v1506_v3  ;;  %v1563_v12 = vsel %vm265_vm3, %v3026_v32, %v1562_v7  ;;  %v3109_v17 = vperm.slane %v1551_v8, %v2936_v34  ;;  %v940_v7 = vrot.slane %v2961_v60, 4 }
  0xc7   : > { %2421 = vrot.lane.b32.xlu1 %v2400_v9, %s2815_s27  ;;  %v1495_v9 = vsel %vm265_vm3, %v3087_v1, %v1494_v0  ;;  %v3113_v25 = vperm.slane %v1507_v10, %v2936_v34 }
  0xc8   : > { %2416 = vrot.lane.b32.xlu2 %v2415_v26, %s2813_s22  ;;  %2406 = vrot.lane.b32.xlu0 %v2405_v28, %s2813_s22  ;;  %v3106_v16 = vperm.slane %v1495_v9, %v2936_v34  ;;  %v3118_v26 = vperm.slane %v1563_v12, %v2936_v34  ;;  %v1586_v29 = vrot.slane %v3109_v17, 4  ;;  %v894_v12 = vrot.slane %v3004_v21, 4 }
  0xc9   : > { %v1528_v15 = vrot.slane %v3113_v25, 4 }
  0xca   : > { %v1530_v28 = vrot.slane %v3106_v16, 4  ;;  %v1587_v36 = vsel %vm265_vm3, %v3118_v26, %v1586_v29 }
  0xcb   : > { %v1529_v30 = vsel %vm265_vm3, %v1528_v15, %v3106_v16 }
  0xcc   : > { %v1531_v35 = vsel %vm265_vm3, %v3113_v25, %v1530_v28  ;;  %v883_v28 = vsel %vm265_vm3, %v882_v48, %v2967_v4  ;;  %v1548_v48 = vrot.slane %v3089_v2, 4 }
  0xcd   : > { %v3127_v37 = vperm.slane %v1531_v35, %v2950_v52  ;;  %v2455_v35 = vpack.i.bf16 %v3075_v58, %v3077_v61  ;;  %v3177_v4 = vperm.slane %v883_v28, %v2936_v34 }
  0xcf   : > { %1900 = vrot.lane.b32.xlu1 %v3024_v31, %s2815_s27  ;;  %4699 = vst [vmem:[#allocation6_spill] sm:$0xff] %v3127_v37 }
  0xd0   : > { %2426 = vrot.lane.b32.xlu2 %v2425_v38, %s2815_s27  ;;  %2431 = vrot.lane.b32.xlu0 %v2430_v40, %s2813_s22  ;;  %v3130_v38 = vperm.slane %v1587_v36, %v2950_v52  ;;  %v1546_v40 = vrot.slane %v3127_v37, 4 }
  0xd2   : > { %4700 = vst [vmem:[#allocation7_spill] sm:$0xff] %v3130_v38  ;;  %v1602_v46 = vrot.slane %v3130_v38, 4  ;;  %v3148_v0 = vsel %vm265_vm3, 0.0, %v1546_v40 }
  0xd3   : > { %4701 = vst [vmem:[#allocation8_spill] sm:$0xff] %v3148_v0 }
  0xd4   : > { %v3151_v3 = vsel %vm265_vm3, 0.0, %v1602_v46  ;;  %v895_v46 = vsel %vm265_vm3, %v894_v12, %v3014_v27 }
  0xd5   : > { %4702 = vst [vmem:[#allocation9_spill] sm:$0xff] %v3151_v3 }
  0xd7   : > { %2441 = vrot.lane.b32.xlu1 %v2440_v57, %s2813_s22  ;;  %v952_v57 = vrot.slane %v3010_v24, 4 }
  0xd8   : > { %1902 = vrot.lane.b32.xlu2 %v3026_v32, %s2815_s27  ;;  %2436 = vrot.lane.b32.xlu0 %v2435_v62, %s2815_s27  ;;  %v896_v62 = vrot.slane %v3014_v27, 4  ;;  %v3194_v27 = vperm.slane %v895_v46, %v2936_v34 }
  0xd9   : > { %v953_v9 = vsel %vm265_vm3, %v3006_v22, %v952_v57 }
  0xda   : > { %v897_v8 = vsel %vm265_vm3, %v3004_v21, %v896_v62  ;;  %v961_v40 = vperm.slane %v953_v9, %v2936_v34  ;;  %v941_v21 = vsel %vm265_vm3, %v2947_v51, %v940_v7  ;;  %v908_v7 = vrot.slane %v3177_v4, 4 }
  0xdb   : > { %v905_v36 = vperm.slane %v897_v8, %v2936_v34  ;;  %v949_v62 = vperm.slane %v941_v21, %v2936_v34  ;;  %v1504_v8 = vrot.slane %v3024_v31, 4  ;;  %v1560_v9 = vrot.slane %v3026_v32, 4 }
  0xdc   : > { %v909_v31 = vsel %vm265_vm3, %v3194_v27, %v908_v7  ;;  %v906_v7 = vrot.slane %v3194_v27, 4 }
  0xde   : > { %v907_v27 = vsel %vm265_vm3, %v906_v7, %v3177_v4 }
  0xdf   : > { %1894 = vrot.lane.b32.xlu1 %v3063_v50, %s2815_s27 }
  0xe0   : > { %2446 = vrot.lane.b32.xlu2 %v2445_v11, %s2813_s22  ;;  %1892 = vrot.lane.b32.xlu0 %v3061_v49, %s2815_s27  ;;  %v950_v11 = vrot.slane %v3006_v22, 4  ;;  %v885_v22 = vsel %vm265_vm3, %v2953_v55, %v884_v63  ;;  %v918_v55 = vrot.slane %v905_v36, 4  ;;  %v1549_v63 = vsel %vm265_vm3, %v1548_v48, %v3075_v58 }
  0xe7   : > { %2451 = vrot.lane.b32.xlu1 %v2959_v59, %s2815_s27  ;;  %v938_v59 = vrot.slane %v2947_v51, 4  ;;  %v893_v51 = vperm.slane %v885_v22, %v2936_v34  ;;  %v1561_v22 = vsel %vm265_vm3, %v1560_v9, %v3063_v50  ;;  %v1584_v50 = vrot.slane %v3118_v26, 4 }
  0xe8   : > { %1896 = vrot.lane.b32.xlu2 %v3087_v1, %s2815_s27  ;;  %1898 = vrot.lane.b32.xlu0 %v3089_v2, %s2815_s27 }
  0xe9   : > { %v939_v29 = vsel %vm265_vm3, %v938_v59, %v2961_v60  ;;  %v951_v60 = vsel %vm265_vm3, %v950_v11, %v3010_v24  ;;  %v974_v59 = vrot.slane %v961_v40, 4  ;;  %v1492_v24 = vrot.slane %v3087_v1, 4 }
  0xea   : > { %v3186_v57 = vperm.slane %v939_v29, %v2936_v34  ;;  %v3197_v2 = vperm.slane %v951_v60, %v2936_v34  ;;  %v919_v12 = vsel %vm265_vm3, %v918_v55, %v893_v51  ;;  %v920_v29 = vrot.slane %v893_v51, 4 }
  0xeb   : > { %v1493_v11 = vsel %vm265_vm3, %v1492_v24, %v3077_v61  ;;  %v975_v28 = vsel %vm265_vm3, %v974_v59, %v949_v62  ;;  %v3238_v21 = vperm.slane %v919_v12, %v2950_v52  ;;  %v1585_v48 = vsel %vm265_vm3, %v1584_v50, %v3109_v17 }
  0xec   : > { %v964_v1 = vrot.slane %v3186_v57, 4  ;;  %v921_v5 = vsel %vm265_vm3, %v905_v36, %v920_v29  ;;  %v3241_v14 = vperm.slane %v975_v28, %v2950_v52  ;;  %v313_v55 = vrot.slane %v3255_v20, 4 }
  0xed   : > { %v3248_v36 = vperm.slane %v921_v5, %v2950_v52  ;;  %v3289_v24 = vperm.slane %v1529_v30, %v2950_v52 }
  0xee   : > { %v965_v32 = vsel %vm265_vm3, %v3197_v2, %v964_v1  ;;  %v2480_v60 = vpack.i.bf16 %v3241_v14, %v3238_v21  ;;  %v314_v1 = vsel %vm265_vm3, 0.0, %v313_v55  ;;  %v990_v15 = vrot.slane %v3241_v14, 4 }
  0xef   : > { %1890 = vrot.lane.b32.xlu1 %v3075_v58, %s2815_s27  ;;  %v3218_v58 = vperm.slane %v1549_v63, %v2936_v34  ;;  %v3292_v63 = vperm.slane %v1585_v48, %v2950_v52 }
  0xf0   : > { %2456 = vrot.lane.b32.xlu2 %v2455_v35, %s2813_s22  ;;  %1888 = vrot.lane.b32.xlu0 %v3077_v61, %s2815_s27  ;;  %v976_v35 = vrot.slane %v949_v62, 4  ;;  %v3221_v61 = vperm.slane %v1493_v11, %v2936_v34 }
  0xf1   : > { %v1574_v26 = vrot.slane %v3218_v58, 4  ;;  %v2495_v28 = vpack.i.bf16 %v3292_v63, %v3289_v24  ;;  %v1600_v30 = vrot.slane %v3292_v63, 4 }
  0xf2   : > { %v977_v6 = vsel %vm265_vm3, %v961_v40, %v976_v35  ;;  %v3265_v40 = vperm.slane %v1561_v22, %v2936_v34  ;;  %v3281_v59 = vpop.permute.xlu2 %2371  ;;  %v934_v22 = vrot.slane %v3238_v21, 4 }
  0xf3   : > { %v3251_v19 = vperm.slane %v977_v6, %v2950_v52 }
  0xf4   : > { %v1575_v17 = vsel %vm265_vm3, %v3265_v40, %v1574_v26  ;;  %v1572_v45 = vrot.slane %v3265_v40, 4  ;;  %v935_v54 = vsel %vm265_vm3, 0.0, %v934_v22 }
  0xf5   : > { %v2485_v51 = vpack.i.bf16 %v3251_v19, %v3248_v36  ;;  %v1583_v11 = vperm.slane %v1575_v17, %v2950_v52  ;;  %v992_v50 = vrot.slane %v3251_v19, 4 }
  0xf7   : > { %2471 = vrot.lane.b32.xlu1 %v2470_v13, %s2817_s28  ;;  %v1505_v13 = vsel %vm265_vm3, %v1504_v8, %v3061_v49  ;;  %v973_v49 = vperm.slane %v965_v32, %v2950_v52  ;;  %v962_v8 = vrot.slane %v3197_v2, 4  ;;  %v3312_v32 = vperm.slane %v907_v27, %v2950_v52 }
  0xf8   : > { %2466 = vrot.lane.b32.xlu2 %v2465_v18, %s2818_s29  ;;  %2461 = vrot.lane.b32.xlu0 %v2460_v23, %s2819_s30  ;;  %v917_v18 = vperm.slane %v909_v31, %v2950_v52  ;;  %v3259_v23 = vperm.slane %v3029_v33, %v2950_v52  ;;  %v3262_v25 = vperm.slane %v1505_v13, %v2936_v34  ;;  %v1518_v33 = vrot.slane %v3221_v61, 4 }
  0xf9   : > { %v963_v2 = vsel %vm265_vm3, %v962_v8, %v3186_v57  ;;  %4703 = vst [vmem:[#allocation10_spill] sm:$0xff] %v3312_v32  ;;  %v930_v6 = vrot.slane %v3312_v32, 4  ;;  %v988_v13 = vrot.slane %v973_v49, 4  ;;  %v1598_v40 = vrot.slane %v1583_v11, 4 }
  0xfa   : > { %v2475_v46 = vpack.i.bf16 %v973_v49, %v917_v18  ;;  %v369_v62 = vrot.slane %v3259_v23, 4  ;;  %v1519_v16 = vsel %vm265_vm3, %v3262_v25, %v1518_v33  ;;  %v3315_v5 = vperm.slane %v963_v2, %v2950_v52 }
  0xfb   : > { %v1527_v9 = vperm.slane %v1519_v16, %v2950_v52  ;;  %v932_v57 = vrot.slane %v917_v18, 4  ;;  %v1516_v43 = vrot.slane %v3262_v25, 4  ;;  %v931_v21 = vsel %vm265_vm3, 0.0, %v930_v6 }
  0xfc   : > { %v370_v12 = vsel %vm265_vm3, 0.0, %v369_v62  ;;  %4704 = vst [vmem:[#allocation11_spill] sm:$0xff] %v3315_v5  ;;  %v986_v4 = vrot.slane %v3315_v5, 4  ;;  %v989_v53 = vsel %vm265_vm3, 0.0, %v988_v13  ;;  %v936_v49 = vrot.slane %v3248_v36, 4 }
  0xfd   : > { %v2500_v29 = vpack.i.bf16 %v370_v12, %v314_v1  ;;  %v2490_v35 = vpack.i.bf16 %v1583_v11, %v1527_v9  ;;  %v933_v18 = vsel %vm265_vm3, 0.0, %v932_v57  ;;  %v1542_v25 = vrot.slane %v1527_v9, 4 }
  0xfe   : > { %v987_v14 = vsel %vm265_vm3, 0.0, %v986_v4  ;;  %v2525_v42 = vpack.i.bf16 %v989_v53, %v933_v18  ;;  %v1517_v26 = vsel %vm265_vm3, %v1516_v43, %v3221_v61  ;;  %v937_v19 = vsel %vm265_vm3, 0.0, %v936_v49 }
  0xff   : > { %2481 = vrot.lane.b32.xlu1 %v2480_v60, %s2818_s29  ;;  %v2520_v41 = vpack.i.bf16 %v987_v14, %v931_v21  ;;  %v1573_v60 = vsel %vm265_vm3, %v1572_v45, %v3218_v58  ;;  %v993_v48 = vsel %vm265_vm3, 0.0, %v992_v50  ;;  %v3359_v33 = vperm.slane %v1517_v26, %v2950_v52 }
 0x100   : > { %2476 = vrot.lane.b32.xlu2 %v2475_v46, %s2819_s30  ;;  %2486 = vrot.lane.b32.xlu0 %v2485_v51, %s2817_s28  ;;  %v1544_v46 = vrot.slane %v3289_v24, 4  ;;  %v3362_v61 = vperm.slane %v1573_v60, %v2950_v52  ;;  %v1543_v58 = vsel %vm265_vm3, 0.0, %v1542_v25  ;;  %v1599_v51 = vsel %vm265_vm3, 0.0, %v1598_v40 }
 0x101   : > { %4705 = vst [vmem:[#allocation12_spill] sm:$0xff] %v3359_v33  ;;  %v1601_v62 = vsel %vm265_vm3, 0.0, %v1600_v30  ;;  %v2535_v16 = vpack.i.bf16 %v993_v48, %v937_v19  ;;  %v2545_v17 = vpack.i.bf16 %v1599_v51, %v1543_v58  ;;  %v1540_v24 = vrot.slane %v3359_v33, 4 }
 0x102   : > { %4706 = vst [vmem:[#allocation13_spill] sm:$0xff] %v3362_v61  ;;  %v1545_v55 = vsel %vm265_vm3, 0.0, %v1544_v46  ;;  %v1596_v63 = vrot.slane %v3362_v61, 4 }
 0x103   : > { %v2550_v7 = vpack.i.bf16 %v1601_v62, %v1545_v55  ;;  %v1541_v1 = vsel %vm265_vm3, 0.0, %v1540_v24 }
 0x104   : > { %v1597_v12 = vsel %vm265_vm3, 0.0, %v1596_v63 }
 0x107   : > { %2496 = vrot.lane.b32.xlu1 %v2495_v28, %s2818_s29  ;;  %v2374_v28 = vunpack.i.h.bf16 %v3281_v59 }
 0x108   : > { %2501 = vrot.lane.b32.xlu2 %v2500_v29, %s2820_s4  ;;  %2491 = vrot.lane.b32.xlu0 %v2490_v35, %s2819_s30  ;;  %v2373_v29 = vunpack.i.l.bf16 %v3281_v59  ;;  %v2540_v35 = vpack.i.bf16 %v1597_v12, %v1541_v1 }
 0x109   : > { %v542_v22 = vrot.slane %v2374_v28, 4 }
 0x10a   : > { %v3309_v31 = vpop.permute.xlu2 %2381 }
 0x10b   : > { %v2384_v27 = vunpack.i.h.bf16 %v3309_v31  ;;  %v2383_v2 = vunpack.i.l.bf16 %v3309_v31 }
 0x10d   : > { %v750_v21 = vrot.slane %v2384_v27, 4  ;;  %v694_v59 = vrot.slane %v2383_v2, 4 }
 0x10f   : > { %2506 = vrot.lane.b32.xlu1 %v2505_v47, %s2821_s5 }
 0x110   : > { %2516 = vrot.lane.b32.xlu2 %v2515_v56, %s2822_s6  ;;  %2511 = vrot.lane.b32.xlu0 %v2510_v44, %s2823_s7  ;;  %v991_v56 = vsel %vm265_vm3, 0.0, %v990_v15  ;;  %v486_v15 = vrot.slane %v2373_v29, 4 }
 0x111   : > { %v2530_v44 = vpack.i.bf16 %v991_v56, %v935_v54 }
 0x112   : > { %v3335_v47 = vpop.permute.xlu2 %2396 }
 0x113   : > { %v2399_v57 = vunpack.i.h.bf16 %v3335_v47  ;;  %v2398_v13 = vunpack.i.l.bf16 %v3335_v47 }
 0x115   : > { %v3391_v31 = vrot.slane %v2399_v57, 4  ;;  %v3395_v54 = vrot.slane %v2398_v13, 4 }
 0x117   : > { %2521 = vrot.lane.b32.xlu1 %v2520_v41, %s2820_s4 }
 0x118   : > { %2531 = vrot.lane.b32.xlu2 %v2530_v44, %s2823_s7  ;;  %2526 = vrot.lane.b32.xlu0 %v2525_v42, %s2821_s5 }
 0x11a   : > { %v3354_v36 = vpop.permute.xlu2 %2401 }
 0x11b   : > { %v2404_v43 = vunpack.i.h.bf16 %v3354_v36  ;;  %v2403_v26 = vunpack.i.l.bf16 %v3354_v36 }
 0x11d   : > { %v1154_v40 = vrot.slane %v2404_v43, 4 }
 0x11f   : > { %2536 = vrot.lane.b32.xlu1 %v2535_v16, %s2822_s6 }
 0x120   : > { %2546 = vrot.lane.b32.xlu2 %v2545_v17, %s2821_s5  ;;  %2551 = vrot.lane.b32.xlu0 %v2550_v7, %s2823_s7 }
 0x121   : > { %v3373_v8 = vpop.permute.xlu1 %2366 }
 0x122   : > { %v3375_v9 = vpop.permute.xlu2 %2416  ;;  %v2362_v11 = vpop.permute.xlu0 %2361  ;;  %v2369_v56 = vunpack.i.h.bf16 %v3373_v8  ;;  %v2368_v41 = vunpack.i.l.bf16 %v3373_v8  ;;  %v1098_v8 = vrot.slane %v2403_v26, 4 }
 0x123   : > { %v2364_v6 = vunpack.i.h.bf16 %v2362_v11  ;;  %v2363_v4 = vunpack.i.l.bf16 %v2362_v11  ;;  %v2419_v60 = vunpack.i.h.bf16 %v3375_v9  ;;  %v4659_v46 = vunpack.i.l.bf16 %v3375_v9 }
 0x124   : > { %v556_v51 = vrot.slane %v2369_v56, 4  ;;  %v500_v55 = vrot.slane %v2368_v41, 4 }
 0x125   : > { %v544_v14 = vrot.slane %v2364_v6, 4  ;;  %v488_v18 = vrot.slane %v2363_v4, 4  ;;  %v543_v44 = vsel %vm265_vm3, %v542_v22, %v2364_v6  ;;  %v487_v49 = vsel %vm265_vm3, %v486_v15, %v2363_v4 }
 0x126   : > { %v3409_v62 = vperm.slane %v543_v44, %v2936_v34  ;;  %v3412_v16 = vperm.slane %v487_v49, %v2936_v34 }
 0x127   : > { %2541 = vrot.lane.b32.xlu1 %v2540_v35, %s2820_s4  ;;  %v545_v30 = vsel %vm265_vm3, %v2374_v28, %v544_v14  ;;  %v489_v19 = vsel %vm265_vm3, %v2373_v29, %v488_v18  ;;  %v3423_v29 = vrot.slane %v2419_v60, 4  ;;  %v3427_v35 = vrot.slane %v4659_v46, 4 }
 0x128   : > { %v553_v11 = vperm.slane %v545_v30, %v2936_v34  ;;  %v497_v1 = vperm.slane %v489_v19, %v2936_v34  ;;  %v568_v15 = vrot.slane %v3409_v62, 4 }
 0x129   : > { %v2392_v45 = vpop.permute.xlu1 %2391 }
 0x12a   : > { %v3387_v53 = vpop.permute.xlu2 %2426  ;;  %v2377_v42 = vpop.permute.xlu0 %2376  ;;  %v2394_v50 = vunpack.i.h.bf16 %v2392_v45  ;;  %v2393_v25 = vunpack.i.l.bf16 %v2392_v45  ;;  %v512_v45 = vrot.slane %v3412_v16, 4 }
 0x12b   : > { %v2379_v48 = vunpack.i.h.bf16 %v2377_v42  ;;  %v2378_v58 = vunpack.i.l.bf16 %v2377_v42 }
 0x12c   : > { %v748_v17 = vrot.slane %v2394_v50, 4  ;;  %v692_v24 = vrot.slane %v2393_v25, 4  ;;  %v695_v63 = vsel %vm265_vm3, %v2393_v25, %v694_v59  ;;  %v751_v7 = vsel %vm265_vm3, %v2394_v50, %v750_v21 }
 0x12d   : > { %v557_v12 = vsel %vm265_vm3, %v2379_v48, %v556_v51  ;;  %v498_v6 = vrot.slane %v2378_v58, 4  ;;  %v501_v4 = vsel %vm265_vm3, %v2378_v58, %v500_v55  ;;  %v3435_v21 = vperm.slane %v695_v63, %v2936_v34 }
 0x12e   : > { %v3438_v59 = vperm.slane %v751_v7, %v2936_v34  ;;  %v693_v18 = vsel %vm265_vm3, %v692_v24, %v2383_v2  ;;  %v749_v42 = vsel %vm265_vm3, %v748_v17, %v2384_v27  ;;  %v554_v44 = vrot.slane %v2379_v48, 4 }
 0x12f   : > { %v565_v49 = vperm.slane %v557_v12, %v2936_v34  ;;  %v580_v50 = vrot.slane %v553_v11, 4  ;;  %v524_v25 = vrot.slane %v497_v1, 4  ;;  %v509_v30 = vperm.slane %v501_v4, %v2936_v34 }
 0x130   : > { %v499_v55 = vsel %vm265_vm3, %v498_v6, %v2368_v41  ;;  %v3448_v7 = vperm.slane %v693_v18, %v2936_v34  ;;  %v730_v27 = vrot.slane %v3435_v21, 4  ;;  %v3452_v2 = vperm.slane %v749_v42, %v2936_v34 }
 0x131   : > { %v2412_v28 = vpop.permute.xlu1 %2411  ;;  %v555_v24 = vsel %vm265_vm3, %v554_v44, %v2369_v56  ;;  %v578_v12 = vrot.slane %v565_v49, 4  ;;  %v3457_v10 = vperm.slane %v499_v55, %v2936_v34  ;;  %v525_v6 = vsel %vm265_vm3, %v509_v30, %v524_v25 }
 0x132   : > { %v3430_v22 = vpop.permute.xlu2 %1902  ;;  %v2387_v14 = vpop.permute.xlu0 %2386  ;;  %v2413_v19 = vunpack.i.l.bf16 %v2412_v28  ;;  %v2414_v63 = vunpack.i.h.bf16 %v2412_v28  ;;  %v522_v39 = vrot.slane %v509_v30, 4  ;;  %v718_v56 = vrot.slane %v3448_v7, 4 }
 0x133   : > { %v2389_v48 = vunpack.i.h.bf16 %v2387_v14  ;;  %v2388_v4 = vunpack.i.l.bf16 %v2387_v14  ;;  %v774_v14 = vrot.slane %v3452_v2, 4  ;;  %v3469_v44 = vperm.slane %v555_v24, %v2936_v34 }
 0x134   : > { %v1096_v41 = vrot.slane %v2413_v19, 4  ;;  %v1099_v28 = vsel %vm265_vm3, %v2413_v19, %v1098_v8  ;;  %v1155_v42 = vsel %vm265_vm3, %v2414_v63, %v1154_v40  ;;  %v1152_v55 = vrot.slane %v2414_v63, 4 }
 0x135   : > { %v762_v51 = vrot.slane %v2389_v48, 4  ;;  %v706_v58 = vrot.slane %v2388_v4, 4  ;;  %v3472_v25 = vperm.slane %v1099_v28, %v2936_v34  ;;  %v705_v30 = vsel %vm265_vm3, %v3395_v54, %v2388_v4 }
 0x136   : > { %v3477_v40 = vperm.slane %v525_v6, %v2950_v52  ;;  %v581_v19 = vsel %vm265_vm3, %v565_v49, %v580_v50  ;;  %v1097_v17 = vsel %vm265_vm3, %v1096_v41, %v2403_v26  ;;  %v3484_v24 = vperm.slane %v1155_v42, %v2936_v34 }
 0x137   : > { %v763_v63 = vsel %vm265_vm3, %v2399_v57, %v762_v51  ;;  %v707_v54 = vsel %vm265_vm3, %v2398_v13, %v706_v58  ;;  %v3493_v4 = vperm.slane %v581_v19, %v2950_v52  ;;  %v523_v49 = vsel %vm265_vm3, %v522_v39, %v497_v1 }
 0x138   : > { %v579_v50 = vsel %vm265_vm3, %v578_v12, %v553_v11  ;;  %v513_v26 = vsel %vm265_vm3, %v3457_v10, %v512_v45  ;;  %v761_v41 = vsel %vm265_vm3, %v3391_v31, %v2389_v48  ;;  %v3502_v28 = vperm.slane %v705_v30, %v2936_v34 }
 0x139   : > { %v3461_v18 = vpop.permute.xlu1 %2421  ;;  %v3505_v47 = vperm.slane %v523_v49, %v2950_v52  ;;  %v3508_v57 = vperm.slane %v579_v50, %v2950_v52  ;;  %v1153_v39 = vsel %vm265_vm3, %v1152_v55, %v2404_v43  ;;  %v2565_v13 = vpack.i.bf16 %v3493_v4, %v3477_v40 }
 0x13a   : > { %v3464_v46 = vpop.permute.xlu2 %2446  ;;  %v2407_v8 = vpop.permute.xlu0 %2406  ;;  %v3516_v11 = vperm.slane %v513_v26, %v2950_v52  ;;  %v569_v31 = vsel %vm265_vm3, %v3469_v44, %v568_v15  ;;  %v771_v1 = vperm.slane %v763_v63, %v2936_v34  ;;  %v715_v45 = vperm.slane %v707_v54, %v2936_v34 }
 0x13b   : > { %v2560_v58 = vpack.i.bf16 %v3508_v57, %v3505_v47  ;;  %v3525_v36 = vperm.slane %v569_v31, %v2950_v52  ;;  %v3530_v51 = vperm.slane %v1097_v17, %v2936_v34  ;;  %v3533_v48 = vperm.slane %v761_v41, %v2936_v34  ;;  %2566 = vrot.lane.b32.xlu0 %v2565_v13, %s2817_s28 }
 0x13c   : > { %v2409_v15 = vunpack.i.h.bf16 %v2407_v8  ;;  %v2408_v12 = vunpack.i.l.bf16 %v2407_v8  ;;  %v1134_v42 = vrot.slane %v3472_v25, 4  ;;  %v3540_v55 = vperm.slane %v1153_v39, %v2936_v34 }
 0x13d   : > { %4707 = vst [vmem:[#allocation14_spill] sm:$0xff] %v3530_v51  ;;  %2561 = vrot.lane.b32.xlu1 %v2560_v58, %s2818_s29  ;;  %v2555_v17 = vpack.i.bf16 %v3525_v36, %v3516_v11  ;;  %v719_v30 = vsel %vm265_vm3, %v3502_v28, %v718_v56  ;;  %v1190_v63 = vrot.slane %v3484_v24, 4  ;;  %v784_v50 = vrot.slane %v771_v1, 4 }
 0x13e   : > { %4708 = vst [vmem:[#allocation15_spill] sm:$0xff] %v3540_v55  ;;  %v1165_v8 = vsel %vm265_vm3, %v3423_v29, %v2409_v15  ;;  %v1166_v54 = vrot.slane %v2409_v15, 4  ;;  %v1109_v49 = vsel %vm265_vm3, %v3427_v35, %v2408_v12  ;;  %v728_v26 = vrot.slane %v715_v45, 4 }
 0x13f   : > { %2556 = vrot.lane.b32.xlu2 %v2555_v17, %s2819_s30  ;;  %v1110_v41 = vrot.slane %v2408_v12, 4  ;;  %v3556_v39 = vperm.slane %v719_v30, %v2950_v52  ;;  %v775_v13 = vsel %vm265_vm3, %v3533_v48, %v774_v14  ;;  %v731_v29 = vsel %vm265_vm3, %v715_v45, %v730_v27 }
 0x140   : > { %v1167_v56 = vsel %vm265_vm3, %v2419_v60, %v1166_v54  ;;  %v4709_v35 = vrot.slane %v3438_v59, 4  ;;  %v3570_v58 = vperm.slane %v1165_v8, %v2936_v34  ;;  %v4710_v12 = vunpack.i.l.bf16 %v3375_v9 }
 0x141   : > { %v3527_v43 = vpop.permute.xlu1 %1900  ;;  %v1175_v15 = vperm.slane %v1167_v56, %v2936_v34  ;;  %v3577_v17 = vperm.slane %v1109_v49, %v2936_v34  ;;  %v3581_v27 = vperm.slane %v775_v13, %v2950_v52  ;;  %v3584_v45 = vperm.slane %v731_v29, %v2950_v52 }
 0x142   : > { %v3536_v6 = vpop.permute.xlu2 %1896  ;;  %v3547_v19 = vpop.permute.xlu0 %2431  ;;  %v787_v31 = vsel %vm265_vm3, %v771_v1, %v4709_v35  ;;  %v1111_v60 = vsel %vm265_vm3, %v4710_v12, %v1110_v41  ;;  %v1122_v30 = vrot.slane %v3530_v51, 4  ;;  %v1178_v9 = vrot.slane %v3540_v55, 4 }
 0x143   : > { %v1119_v14 = vperm.slane %v1111_v60, %v2936_v34  ;;  %v3587_v1 = vperm.slane %v787_v31, %v2950_v52  ;;  %v729_v8 = vsel %vm265_vm3, %v728_v26, %v3435_v21  ;;  %v785_v54 = vsel %vm265_vm3, %v784_v50, %v3438_v59 }
 0x144   : > { %v2570_v56 = vpack.i.bf16 %v3581_v27, %v3556_v39  ;;  %v3602_v29 = vperm.slane %v729_v8, %v2950_v52  ;;  %v4711_v31 = vunpack.i.h.bf16 %v3387_v53  ;;  %v4712_v21 = vunpack.i.l.bf16 %v3387_v53 }
 0x145   : > { %v1132_v41 = vrot.slane %v1119_v14, 4  ;;  %v2580_v13 = vpack.i.bf16 %v3587_v1, %v3584_v45  ;;  %v1188_v59 = vrot.slane %v1175_v15, 4  ;;  %v3609_v50 = vperm.slane %v785_v54, %v2950_v52 }
 0x146   : > { %v1314_v12 = vrot.slane %v4711_v31, 4  ;;  %v1316_v26 = vrot.slane %v4712_v21, 4  ;;  %2571 = vrot.lane.b32.xlu1 %v2570_v56, %s2819_s30  ;;  %v1123_v0 = vsel %vm265_vm3, %v3577_v17, %v1122_v30  ;;  %v1179_v8 = vsel %vm265_vm3, %v3570_v58, %v1178_v9 }
 0x147   : > { %4713 = vst [vmem:[#allocation16_spill] sm:$0xff] %v3609_v50  ;;  %v1135_v3 = vsel %vm265_vm3, %v1119_v14, %v1134_v42  ;;  %v1191_v31 = vsel %vm265_vm3, %v1175_v15, %v1190_v63  ;;  %v4665_v21 = vunpack.i.h.bf16 %v3464_v46  ;;  %v2448_v37 = vunpack.i.l.bf16 %v3464_v46  ;;  %2581 = vrot.lane.b32.xlu2 %v2580_v13, %s2817_s28 }
 0x148   : > { %v2575_v54 = vpack.i.bf16 %v3609_v50, %v3602_v29  ;;  %v3626_v56 = vperm.slane %v1123_v0, %v2950_v52  ;;  %v3629_v30 = vperm.slane %v1179_v8, %v2950_v52  ;;  %v3632_v9 = vperm.slane %v1135_v3, %v2950_v52 }
 0x149   : > { %v3595_v49 = vpop.permute.xlu1 %2441  ;;  %v3635_v42 = vperm.slane %v1191_v31, %v2950_v52  ;;  %v1133_v63 = vsel %vm265_vm3, %v1132_v41, %v3472_v25  ;;  %v1189_v0 = vsel %vm265_vm3, %v1188_v59, %v3484_v24  ;;  %v4720_v31 = vunpack.i.l.bf16 %v3387_v53 }
 0x14a   : > { %v2457_v35 = vpop.permute.xlu2 %2456  ;;  %v3611_v60 = vpop.permute.xlu0 %2436  ;;  %4714 = vst [vmem:[#allocation17_spill] sm:$0xff] %v3626_v56  ;;  %2576 = vrot.lane.b32.xlu0 %v2575_v54, %s2818_s29  ;;  %v3641_v15 = vperm.slane %v1133_v63, %v2950_v52  ;;  %v2443_v14 = vunpack.i.l.bf16 %v3595_v49  ;;  %v3647_v13 = vperm.slane %v1189_v0, %v2950_v52  ;;  %v2444_v3 = vunpack.i.h.bf16 %v3595_v49 }
 0x14b   : > { %4715 = vst [vmem:[#allocation18_spill] sm:$0xff] %v3629_v30  ;;  %v2459_v8 = vunpack.i.h.bf16 %v2457_v35  ;;  %v1315_v25 = vsel %vm265_vm3, %v1314_v12, %v4720_v31  ;;  %v4721_v41 = vunpack.i.h.bf16 %v3387_v53  ;;  %v2595_v63 = vpack.i.bf16 %v3635_v42, %v3632_v9 }
 0x14c   : > { %4716 = vst [vmem:[#allocation19_spill] sm:$0xff] %v3632_v9  ;;  %v1762_v59 = vrot.slane %v4665_v21, 4  ;;  %v1706_v0 = vrot.slane %v2448_v37, 4  ;;  %v2433_v49 = vunpack.i.l.bf16 %v3547_v19  ;;  %v2585_v38 = vpack.i.bf16 %v3629_v30, %v3626_v56 }
 0x14d   : > { %4717 = vst [vmem:[#allocation20_spill] sm:$0xff] %v3635_v42  ;;  %v1317_v54 = vsel %vm265_vm3, %v4721_v41, %v1316_v26  ;;  %v2434_v53 = vunpack.i.h.bf16 %v3547_v19  ;;  %v2590_v12 = vpack.i.bf16 %v3647_v13, %v3641_v15  ;;  %v1720_v26 = vrot.slane %v2443_v14, 4 }
 0x14e   : > { %4718 = vst [vmem:[#allocation21_spill] sm:$0xff] %v3641_v15  ;;  %v2458_v31 = vunpack.i.l.bf16 %v2457_v35  ;;  %2586 = vrot.lane.b32.xlu1 %v2585_v38, %s2819_s30  ;;  %v1776_v21 = vrot.slane %v2444_v3, 4  ;;  %v1763_v61 = vsel %vm265_vm3, %v1762_v59, %v2459_v8  ;;  %v3675_v32 = vperm.slane %v1315_v25, %v2936_v34 }
 0x14f   : > { %4719 = vst [vmem:[#allocation22_spill] sm:$0xff] %v3647_v13  ;;  %v3678_v5 = vperm.slane %v1317_v54, %v2936_v34  ;;  %2596 = vrot.lane.b32.xlu2 %v2595_v63, %s2817_s28  ;;  %v2424_v13 = vunpack.i.h.bf16 %v3461_v18  ;;  %v1718_v15 = vrot.slane %v2433_v49, 4  ;;  %v1774_v42 = vrot.slane %v2434_v53, 4 }
 0x150   : > { %v1707_v19 = vsel %vm265_vm3, %v1706_v0, %v2458_v31  ;;  %v1721_v25 = vsel %vm265_vm3, %v2433_v49, %v1720_v26  ;;  %v1708_v59 = vrot.slane %v2458_v31, 4  ;;  %v3690_v54 = vperm.slane %v1763_v61, %v2936_v34 }
 0x151   : > { %v3658_v24 = vpop.permute.xlu1 %1894  ;;  %v3685_v38 = vperm.slane %v1707_v19, %v2936_v34  ;;  %v1719_v63 = vsel %vm265_vm3, %v1718_v15, %v2443_v14  ;;  %v1777_v0 = vsel %vm265_vm3, %v2434_v53, %v1776_v21  ;;  %v1764_v9 = vrot.slane %v2459_v8, 4 }
 0x152   : > { %v3665_v33 = vpop.permute.xlu2 %2466  ;;  %v3670_v41 = vpop.permute.xlu0 %1892  ;;  %2591 = vrot.lane.b32.xlu0 %v2590_v12, %s2818_s29  ;;  %4723 = vst [vmem:[#allocation24_spill] sm:$0xff] %v3690_v54  ;;  %v2438_v35 = vunpack.i.l.bf16 %v3611_v60  ;;  %v1980_v19 = vrot.slane %v3430_v22, 4  ;;  %v2439_v12 = vunpack.i.h.bf16 %v3611_v60  ;;  %v1360_v26 = vrot.slane %v2424_v13, 4 }
 0x153   : > { %4722 = vst [vmem:[#allocation23_spill] sm:$0xff] %v3685_v38  ;;  %v1732_v56 = vrot.slane %v3685_v38, 4  ;;  %v4724_v61 = vunpack.i.l.bf16 %v3461_v18  ;;  %v3702_v15 = vperm.slane %v1721_v25, %v2936_v34  ;;  %v1775_v21 = vsel %vm265_vm3, %v1774_v42, %v2444_v3 }
 0x154   : > { %v3708_v8 = vperm.slane %v1719_v63, %v2936_v34  ;;  %v3711_v53 = vperm.slane %v1777_v0, %v2936_v34  ;;  %v1709_v60 = vsel %vm265_vm3, %v2448_v37, %v1708_v59  ;;  %v1788_v30 = vrot.slane %v3690_v54, 4 }
 0x155   : > { %v1304_v31 = vrot.slane %v4724_v61, 4  ;;  %v1924_v61 = vrot.slane %v3527_v43, 4  ;;  %v1912_v25 = vrot.slane %v3536_v6, 4  ;;  %v4727_v42 = vunpack.i.h.bf16 %v3464_v46 }
 0x156   : > { %4726 = vst [vmem:[#allocation26_spill] sm:$0xff] %v3708_v8  ;;  %v3723_v63 = vperm.slane %v1775_v21, %v2936_v34  ;;  %v1372_v0 = vrot.slane %v2439_v12, 4  ;;  %v1981_v37 = vsel %vm265_vm3, %v1980_v19, %v3658_v24  ;;  %v1733_v59 = vsel %vm265_vm3, %v3708_v8, %v1732_v56 }
 0x157   : > { %v1765_v3 = vsel %vm265_vm3, %v4727_v42, %v1764_v9  ;;  %v3731_v55 = vperm.slane %v1709_v60, %v2936_v34  ;;  %v1982_v46 = vrot.slane %v3658_v24, 4  ;;  %v3735_v9 = vperm.slane %v1733_v59, %v2950_v52 }
 0x158   : > { %4728 = vst [vmem:[#allocation27_spill] sm:$0xff] %v3723_v63  ;;  %v3739_v42 = vperm.slane %v1765_v3, %v2936_v34  ;;  %v1789_v19 = vsel %vm265_vm3, %v3723_v63, %v1788_v30  ;;  %v3745_v54 = vperm.slane %v1981_v37, %v2936_v34  ;;  %v1373_v59 = vsel %vm265_vm3, %v2438_v35, %v1372_v0 }
 0x159   : > { %v2452_v49 = vpop.permute.xlu1 %2451  ;;  %v3748_v60 = vperm.slane %v1789_v19, %v2950_v52  ;;  %v1926_v21 = vrot.slane %v3670_v41, 4  ;;  %v3766_v30 = vperm.slane %v1373_v59, %v2936_v34 }
 0x15a   : > { %v3705_v14 = vpop.permute.xlu2 %2476  ;;  %v3715_v38 = vpop.permute.xlu0 %1898  ;;  %v2454_v51 = vunpack.i.h.bf16 %v2452_v49  ;;  %v2453_v24 = vunpack.i.l.bf16 %v2452_v49 }
 0x15b   : > { %4725 = vst [vmem:[#allocation25_spill] sm:$0xff] %v3705_v14  ;;  %v1370_v14 = vrot.slane %v2438_v35, 4  ;;  %v1968_v3 = vrot.slane %v3715_v38, 4  ;;  %v1925_v35 = vsel %vm265_vm3, %v1924_v61, %v3670_v41 }
 0x15c   : > { %4729 = vst [vmem:[#allocation28_spill] sm:$0xff] %v3748_v60  ;;  %v1358_v8 = vrot.slane %v2454_v51, 4  ;;  %v1302_v37 = vrot.slane %v2453_v24, 4  ;;  %v1305_v59 = vsel %vm265_vm3, %v2453_v24, %v1304_v31 }
 0x15d   : > { %v1371_v56 = vsel %vm265_vm3, %v1370_v14, %v2439_v12  ;;  %v1983_v12 = vsel %vm265_vm3, %v3430_v22, %v1982_v46  ;;  %v2600_v14 = vpack.i.bf16 %v3748_v60, %v3735_v9  ;;  %v4730_v22 = vunpack.i.l.bf16 %v3461_v18 }
 0x15e   : > { %v3759_v19 = vperm.slane %v1371_v56, %v2936_v34  ;;  %v1359_v49 = vsel %vm265_vm3, %v1358_v8, %v2424_v13  ;;  %v3779_v13 = vperm.slane %v1983_v12, %v2936_v34  ;;  %v1927_v8 = vsel %vm265_vm3, %v3527_v43, %v1926_v21 }
 0x15f   : > { %2601 = vrot.lane.b32.xlu0 %v2600_v14, %s2819_s30  ;;  %v1303_v46 = vsel %vm265_vm3, %v1302_v37, %v4730_v22  ;;  %v3773_v56 = vperm.slane %v1359_v49, %v2936_v34  ;;  %v3795_v43 = vperm.slane %v1925_v35, %v2936_v34  ;;  %v3808_v24 = vperm.slane %v1305_v59, %v2936_v34 }
 0x160   : > { %v3784_v61 = vperm.slane %v1303_v46, %v2936_v34 }
 0x161   : > { %v1891_v50 = vpop.permute.xlu1 %1890  ;;  %v1384_v14 = vrot.slane %v3773_v56, 4 }
 0x162   : > { %v1969_v0 = vsel %vm265_vm3, %v1968_v3, %v1891_v50  ;;  %v1889_v63 = vpop.permute.xlu0 %1888  ;;  %v2502_v41 = vpop.permute.xlu2 %2501  ;;  %v1361_v3 = vsel %vm265_vm3, %v2454_v51, %v1360_v26  ;;  %v1970_v37 = vrot.slane %v1891_v50, 4  ;;  %v1328_v49 = vrot.slane %v3784_v61, 4 }
 0x163   : > { %v3776_v60 = vperm.slane %v1969_v0, %v2936_v34  ;;  %v1913_v18 = vsel %vm265_vm3, %v1912_v25, %v1889_v63  ;;  %v1914_v0 = vrot.slane %v1889_v63, 4  ;;  %v2504_v22 = vunpack.i.h.bf16 %v2502_v41 }
 0x164   : > { %v3792_v12 = vperm.slane %v1913_v18, %v2936_v34  ;;  %v1385_v31 = vsel %vm265_vm3, %v3759_v19, %v1384_v14  ;;  %v1394_v51 = vrot.slane %v3766_v30, 4  ;;  %v3802_v50 = vperm.slane %v1361_v3, %v2936_v34 }
 0x165   : > { %4731 = vst [vmem:[#allocation29_spill] sm:$0xff] %v3776_v60  ;;  %v1994_v21 = vrot.slane %v3776_v60, 4  ;;  %v2503_v25 = vunpack.i.l.bf16 %v2502_v41  ;;  %v1971_v35 = vsel %vm265_vm3, %v3715_v38, %v1970_v37  ;;  %v1329_v46 = vsel %vm265_vm3, %v3675_v32, %v1328_v49 }
 0x166   : > { %v1938_v26 = vrot.slane %v3792_v12, 4  ;;  %v3815_v18 = vperm.slane %v1385_v31, %v2950_v52  ;;  %v1915_v3 = vsel %vm265_vm3, %v3536_v6, %v1914_v0  ;;  %v447_v41 = vsel %vm433_vm4, %v3259_v23, %v2504_v22 }
 0x167   : > { %v3822_v14 = vperm.slane %v1329_v46, %v2950_v52  ;;  %v1995_v37 = vsel %vm265_vm3, %v3745_v54, %v1994_v21  ;;  %v434_v49 = vsel %vm433_vm4, %v3255_v20, %v2503_v25  ;;  %v3839_v22 = vperm.slane %v1971_v35, %v2936_v34 }
 0x168   : > { %v1939_v38 = vsel %vm265_vm3, %v3795_v43, %v1938_v26  ;;  %v3836_v0 = vperm.slane %v1995_v37, %v2950_v52  ;;  %v4733_v20 = vrot.slane %v3678_v5, 4  ;;  %v1800_v25 = vrot.slane %v3739_v42, 4 }
 0x169   : > { %v3805_v63 = vpop.permute.xlu1 %2471  ;;  %v2605_v6 = vpack.i.bf16 %v3815_v18, %v3822_v14  ;;  %v3833_v23 = vperm.slane %v1939_v38, %v2950_v52  ;;  %v1395_v35 = vsel %vm265_vm3, %v1394_v51, %v3802_v50  ;;  %v2004_v46 = vrot.slane %v3779_v13, 4 }
 0x16a   : > { %4732 = vst [vmem:[#allocation30_spill] sm:$0xff] %v3805_v63  ;;  %v2462_v59 = vpop.permute.xlu0 %2461  ;;  %v1339_v26 = vsel %vm265_vm3, %v4733_v20, %v3808_v24  ;;  %2057 = vrot.lane.b32.xlu1 %v3836_v0, %s2819_s30  ;;  %v4735_v38 = vrot.slane %v3711_v53, 4  ;;  %v716_v51 = vrot.slane %v3502_v28, 4  ;;  %v3877_v20 = vperm.slane %v1395_v35, %v2950_v52 }
 0x16b   : > { %v2464_v63 = vunpack.i.h.bf16 %v2462_v59  ;;  %v2463_v60 = vunpack.i.l.bf16 %v2462_v59  ;;  %2606 = vrot.lane.b32.xlu2 %v2605_v6, %s2819_s30  ;;  %2029 = vrot.lane.b32.xlu0 %v3833_v23, %s2819_s30  ;;  %v1923_v59 = vperm.slane %v1915_v3, %v2936_v34  ;;  %v3874_v6 = vperm.slane %v1339_v26, %v2950_v52 }
 0x16c   : > { %v1799_v37 = vsel %vm265_vm3, %v4735_v38, %v3739_v42  ;;  %v4737_v42 = vrot.slane %v3731_v55, 4  ;;  %v510_v26 = vrot.slane %v3457_v10, 4 }
 0x16d   : > { %v3842_v31 = vsel %vm435_vm5, %v434_v49, %v2463_v60  ;;  %v3845_v21 = vsel %vm435_vm5, %v447_v41, %v2464_v63  ;;  %v4734_v60 = vrot.slane %v3702_v15, 4  ;;  %v1935_v41 = vperm.slane %v1927_v8, %v2936_v34 }
 0x16e   : > { %v2005_v34 = vsel %vm265_vm3, %v2004_v46, %v3839_v22  ;;  %v3885_v3 = vperm.slane %v1799_v37, %v2950_v52  ;;  %v1745_v28 = vsel %vm265_vm3, %v3702_v15, %v4737_v42  ;;  %v1801_v46 = vsel %vm265_vm3, %v3711_v53, %v1800_v25 }
 0x16f   : > { %v1743_v63 = vsel %vm265_vm3, %v4734_v60, %v3731_v55  ;;  %v772_v60 = vrot.slane %v3533_v48, 4  ;;  %v1948_v37 = vrot.slane %v1935_v41, 4  ;;  %v3900_v55 = vperm.slane %v2005_v34, %v2950_v52 }
 0x170   : > { %v3882_v8 = vperm.slane %v1743_v63, %v2950_v52  ;;  %v566_v63 = vrot.slane %v3469_v44, 4  ;;  %v2615_v15 = vpack.i.bf16 %v3877_v20, %v3874_v6  ;;  %v3905_v10 = vperm.slane %v1745_v28, %v2950_v52 }
 0x171   : > { %v3871_v49 = vpop.permute.xlu1 %2481  ;;  %v536_v48 = vrot.slane %v3516_v11, 4  ;;  %v3911_v44 = vperm.slane %v1801_v46, %v2950_v52  ;;  %v592_v25 = vrot.slane %v3525_v36, 4  ;;  %v717_v34 = vsel %vm265_vm3, %v716_v51, %v3448_v7 }
 0x172   : > { %4736 = vst [vmem:[#allocation31_spill] sm:$0xff] %v3871_v49  ;;  %v3893_v35 = vpop.permute.xlu0 %2486  ;;  %v1950_v49 = vrot.slane %v1923_v59, 4  ;;  %v2610_v53 = vpack.i.bf16 %v3885_v3, %v3882_v8  ;;  %v3920_v42 = vperm.slane %v717_v34, %v2950_v52  ;;  %v773_v11 = vsel %vm265_vm3, %v772_v60, %v3452_v2 }
 0x173   : > { %4738 = vst [vmem:[#allocation32_spill] sm:$0xff] %v3893_v35  ;;  %2065 = vrot.lane.b32.xlu2 %v3900_v55, %s2818_s29  ;;  %2616 = vrot.lane.b32.xlu0 %v2615_v15, %s2818_s29  ;;  %v511_v28 = vsel %vm265_vm3, %v510_v26, %v3412_v16  ;;  %v538_v46 = vrot.slane %v3505_v47, 4  ;;  %v1949_v7 = vsel %vm265_vm3, %v1948_v37, %v1923_v59  ;;  %v1120_v2 = vrot.slane %v3577_v17, 4 }
 0x174   : > { %4739 = vst [vmem:[#allocation33_spill] sm:$0xff] %v3920_v42  ;;  %2611 = vrot.lane.b32.xlu1 %v2610_v53, %s2818_s29  ;;  %v3930_v36 = vperm.slane %v773_v11, %v2950_v52  ;;  %v3933_v51 = vperm.slane %v511_v28, %v2950_v52  ;;  %v567_v15 = vsel %vm265_vm3, %v566_v63, %v3409_v62  ;;  %v740_v16 = vrot.slane %v3920_v42, 4  ;;  %v4747_v42 = vld [vmem:[#allocation14_spill] sm:$0xff] }
 0x175   : > { %v3942_v47 = vperm.slane %v567_v15, %v2950_v52  ;;  %v594_v59 = vrot.slane %v3508_v57, 4  ;;  %v2469_v26 = vunpack.i.h.bf16 %v3665_v33  ;;  %v537_v37 = vsel %vm265_vm3, 0.0, %v536_v48 }
 0x176   : > { %4740 = vst [vmem:[#allocation34_spill] sm:$0xff] %v3930_v36  ;;  %v593_v53 = vsel %vm265_vm3, 0.0, %v592_v25  ;;  %v746_v34 = vrot.slane %v3584_v45, 4  ;;  %v2620_v62 = vpack.i.bf16 %v3911_v44, %v3905_v10  ;;  %v3954_v63 = vperm.slane %v1949_v7, %v2950_v52 }
 0x177   : > { %4741 = vst [vmem:[#allocation35_spill] sm:$0xff] %v3933_v51  ;;  %v796_v11 = vrot.slane %v3930_v36, 4  ;;  %v3958_v57 = vsel %vm265_vm3, 0.0, %v538_v46  ;;  %v1951_v28 = vsel %vm265_vm3, %v1935_v41, %v1950_v49  ;;  %v534_v48 = vrot.slane %v3933_v51, 4  ;;  %v4746_v51 = vld [vmem:[#allocation16_spill] sm:$0xff] }
 0x178   : > { %4743 = vst [vmem:[#allocation37_spill] sm:$0xff] %v3942_v47  ;;  %v590_v45 = vrot.slane %v3942_v47, 4  ;;  %v2630_v25 = vpack.i.bf16 %v593_v53, %v537_v37  ;;  %v741_v15 = vsel %vm265_vm3, 0.0, %v740_v16  ;;  %v3965_v38 = vsel %vm265_vm3, 0.0, %v594_v59 }
 0x179   : > { %v3938_v60 = vpop.permute.xlu1 %2496  ;;  %4744 = vst [vmem:[#allocation38_spill] sm:$0xff] %v3954_v63  ;;  %v3970_v46 = vsel %vm265_vm3, 0.0, %v746_v34  ;;  %v802_v41 = vrot.slane %v3587_v1, 4  ;;  %v540_v49 = vrot.slane %v3477_v40, 4  ;;  %v797_v37 = vsel %vm265_vm3, 0.0, %v796_v11 }
 0x17a   : > { %4742 = vst [vmem:[#allocation36_spill] sm:$0xff] %v3938_v60  ;;  %v3951_v17 = vpop.permute.xlu0 %2491  ;;  %v596_v16 = vrot.slane %v3493_v4, 4  ;;  %v742_v59 = vrot.slane %v3556_v39, 4  ;;  %v798_v53 = vrot.slane %v3581_v27, 4  ;;  %v535_v34 = vsel %vm265_vm3, 0.0, %v534_v48 }
 0x17b   : > { %2621 = vrot.lane.b32.xlu2 %v2620_v62, %s2817_s28  ;;  %2631 = vrot.lane.b32.xlu0 %v2630_v25, %s2821_s5  ;;  %v591_v1 = vsel %vm265_vm3, 0.0, %v590_v45  ;;  %v3985_v40 = vsel %vm265_vm3, 0.0, %v802_v41  ;;  %v3988_v62 = vsel %vm265_vm3, 0.0, %v540_v49  ;;  %v4001_v45 = vpop.permute.xlu2 %2516  ;;  %v2468_v4 = vunpack.i.l.bf16 %v3665_v33 }
 0x17c   : > { %2037 = vrot.lane.b32.xlu1 %v3954_v63, %s2818_s29  ;;  %v3993_v39 = vsel %vm265_vm3, 0.0, %v596_v16  ;;  %v3996_v27 = vsel %vm265_vm3, 0.0, %v742_v59  ;;  %v3999_v48 = vsel %vm265_vm3, 0.0, %v798_v53  ;;  %v4009_v16 = vperm.slane %v1951_v28, %v2950_v52 }
 0x17d   : > { %v2640_v49 = vpack.i.bf16 %v3993_v39, %v3988_v62  ;;  %v744_v53 = vrot.slane %v3602_v29, 4  ;;  %v800_v47 = vrot.slane %v4746_v51, 4  ;;  %v2645_v39 = vpack.i.bf16 %v797_v37, %v741_v15  ;;  %v4748_v29 = vld [vmem:[#allocation15_spill] sm:$0xff]  ;;  %v4750_v15 = vld [vmem:[#allocation17_spill] sm:$0xff] }
 0x17e   : > { %4745 = vst [vmem:[#allocation39_spill] sm:$0xff] %v4009_v16  ;;  %v1121_v7 = vsel %vm265_vm3, %v1120_v2, %v4747_v42  ;;  %v2625_v36 = vpack.i.bf16 %v591_v1, %v535_v34  ;;  %v4749_v51 = vrot.slane %v3570_v58, 4  ;;  %v1146_v42 = vrot.slane %v4750_v15, 4  ;;  %v4751_v2 = vld [vmem:[#allocation18_spill] sm:$0xff]  ;;  %v4752_v34 = vld [vmem:[#allocation19_spill] sm:$0xff] }
 0x17f   : > { %v1202_v37 = vrot.slane %v4751_v2, 4  ;;  %v1150_v1 = vrot.slane %v4752_v34, 4  ;;  %v4756_v2 = vld [vmem:[#allocation25_spill] sm:$0xff] }
 0x180   : > { %v1177_v60 = vsel %vm265_vm3, %v4749_v51, %v4748_v29  ;;  %v2478_v34 = vunpack.i.l.bf16 %v4756_v2 }
 0x181   : > { %v2507_v11 = vpop.permute.xlu1 %2506  ;;  %v4063_v29 = vsel %vm265_vm3, 0.0, %v1150_v1 }
 0x182   : > { %v2509_v25 = vunpack.i.h.bf16 %v2507_v11  ;;  %v2508_v41 = vunpack.i.l.bf16 %v2507_v11  ;;  %v4011_v59 = vpop.permute.xlu0 %2511 }
 0x183   : > { %2045 = vrot.lane.b32.xlu2 %v4009_v16, %s2817_s28  ;;  %2646 = vrot.lane.b32.xlu0 %v2645_v39, %s2820_s4  ;;  %v4758_v39 = vld [vmem:[#allocation11_spill] sm:$0xff]  ;;  %v4759_v16 = vld [vmem:[#allocation10_spill] sm:$0xff] }
 0x184   : > { %v438_v11 = vsel %vm437_vm6, %v3842_v31, %v2508_v41  ;;  %v449_v62 = vsel %vm437_vm6, %v3845_v21, %v2509_v25  ;;  %v4032_v31 = vsel %vm265_vm3, 0.0, %v744_v53  ;;  %v4035_v21 = vsel %vm265_vm3, 0.0, %v800_v47  ;;  %2626 = vrot.lane.b32.xlu1 %v2625_v36, %s2820_s4 }
 0x185   : > { %v4022_v33 = vsel %vm439_vm7, %v438_v11, %v2468_v4  ;;  %v4025_v28 = vsel %vm439_vm7, %v449_v62, %v2469_v26  ;;  %v4043_v26 = vperm.slane %v1121_v7, %v2950_v52  ;;  %v2655_v58 = vpack.i.bf16 %v4035_v21, %v4032_v31  ;;  %v4753_v4 = vld [vmem:[#allocation20_spill] sm:$0xff]  ;;  %v4754_v7 = vld [vmem:[#allocation21_spill] sm:$0xff] }
 0x186   : > { %v1206_v47 = vrot.slane %v4753_v4, 4  ;;  %v4051_v25 = vperm.slane %v1177_v60, %v2950_v52  ;;  %v4054_v41 = vsel %vm265_vm3, 0.0, %v1146_v42  ;;  %v4057_v53 = vsel %vm265_vm3, 0.0, %v1202_v37  ;;  %v4755_v60 = vld [vmem:[#allocation22_spill] sm:$0xff] }
 0x187   : > { %v1148_v11 = vrot.slane %v4754_v7, 4  ;;  %v1204_v51 = vrot.slane %v4755_v60, 4  ;;  %v2479_v37 = vunpack.i.h.bf16 %v4756_v2 }
 0x188   : > { %v4066_v36 = vsel %vm265_vm3, 0.0, %v1206_v47  ;;  %v4079_v47 = vpop.permute.xlu2 %2531 }
 0x189   : > { %v2522_v62 = vpop.permute.xlu1 %2521  ;;  %v4072_v42 = vsel %vm265_vm3, 0.0, %v1148_v11  ;;  %v4077_v1 = vsel %vm265_vm3, 0.0, %v1204_v51  ;;  %4757 = vst [vmem:[#allocation16_spill] sm:$0xff] %v4079_v47 }
 0x18a   : > { %v2524_v31 = vunpack.i.h.bf16 %v2522_v62  ;;  %v2523_v21 = vunpack.i.l.bf16 %v2522_v62  ;;  %v2527_v4 = vpop.permute.xlu0 %2526  ;;  %v2675_v2 = vpack.i.bf16 %v4077_v1, %v4072_v42 }
 0x18b   : > { %v2529_v7 = vunpack.i.h.bf16 %v2527_v4  ;;  %v2528_v60 = vunpack.i.l.bf16 %v2527_v4  ;;  %v1144_v4 = vrot.slane %v4043_v26, 4 }
 0x18c   : > { %v1057_v62 = vsel %vm433_vm4, %v4758_v39, %v2524_v31  ;;  %v1050_v15 = vsel %vm433_vm4, %v4759_v16, %v2523_v21  ;;  %v1200_v39 = vrot.slane %v4051_v25, 4  ;;  %v4760_v31 = vld [vmem:[#allocation26_spill] sm:$0xff]  ;;  %v4761_v16 = vpack.i.bf16 %v3965_v38, %v3958_v57  ;;  %2641 = vrot.lane.b32.xlu1 %v2640_v49, %s2822_s6  ;;  %v4765_v57 = vld [vmem:[#allocation23_spill] sm:$0xff] }
 0x18d   : > { %v1058_v11 = vsel %vm435_vm5, %v1057_v62, %v2479_v37  ;;  %v1051_v35 = vsel %vm435_vm5, %v1050_v15, %v2478_v34  ;;  %v1730_v47 = vrot.slane %v4760_v31, 4  ;;  %v4762_v21 = vpack.i.bf16 %v3985_v40, %v3970_v46  ;;  %v4763_v15 = vld [vmem:[#allocation27_spill] sm:$0xff]  ;;  %v4764_v62 = vld [vmem:[#allocation28_spill] sm:$0xff] }
 0x18e   : > { %v4090_v51 = vsel %vm437_vm6, %v1058_v11, %v2529_v7  ;;  %v4093_v63 = vsel %vm437_vm6, %v1051_v35, %v2528_v60  ;;  %2636 = vrot.lane.b32.xlu2 %v4761_v16, %s2823_s7  ;;  %v1786_v37 = vrot.slane %v4763_v15, 4  ;;  %v1756_v35 = vrot.slane %v3735_v9, 4  ;;  %v4766_v40 = vld [vmem:[#allocation24_spill] sm:$0xff] }
 0x18f   : > { %2661 = vrot.lane.b32.xlu0 %v4762_v21, %s2822_s6  ;;  %v1145_v7 = vsel %vm265_vm3, 0.0, %v1144_v4  ;;  %v1201_v60 = vsel %vm265_vm3, 0.0, %v1200_v39  ;;  %v1812_v38 = vrot.slane %v4764_v62, 4  ;;  %v1731_v11 = vsel %vm265_vm3, %v1730_v47, %v4765_v57 }
 0x190   : > { %v1326_v46 = vrot.slane %v3675_v32, 4  ;;  %v1787_v31 = vsel %vm265_vm3, %v1786_v37, %v4766_v40  ;;  %v4120_v49 = vsel %vm265_vm3, 0.0, %v1756_v35  ;;  %v1382_v9 = vrot.slane %v3759_v19, 4  ;;  %v2547_v21 = vpop.permute.xlu2 %2546 }
 0x191   : > { %v4109_v34 = vpop.permute.xlu1 %2536  ;;  %v2665_v16 = vpack.i.bf16 %v1201_v60, %v1145_v7  ;;  %v4124_v4 = vperm.slane %v1731_v11, %v2950_v52  ;;  %v4129_v47 = vsel %vm265_vm3, 0.0, %v1812_v38  ;;  %v4767_v32 = vpack.i.bf16 %v3999_v48, %v3996_v27 }
 0x192   : > { %v1327_v39 = vsel %vm265_vm3, %v1326_v46, %v3784_v61  ;;  %v4137_v19 = vperm.slane %v1787_v31, %v2950_v52  ;;  %v1383_v15 = vsel %vm265_vm3, %v1382_v9, %v3773_v56  ;;  %v2695_v37 = vpack.i.bf16 %v4129_v47, %v4120_v49  ;;  %v4768_v46 = vld [vmem:[#allocation13_spill] sm:$0xff]  ;;  %v4769_v31 = vld [vmem:[#allocation12_spill] sm:$0xff]  ;;  %v4776_v49 = vld [vmem:[#allocation38_spill] sm:$0xff] }
 0x193   : > { %v1936_v61 = vrot.slane %v3795_v43, 4  ;;  %v1340_v35 = vrot.slane %v3808_v24, 4  ;;  %v1396_v7 = vrot.slane %v3802_v50, 4  ;;  %v2006_v27 = vrot.slane %v3839_v22, 4 }
 0x194   : > { %2656 = vrot.lane.b32.xlu1 %v2655_v58, %s2823_s7  ;;  %v2549_v48 = vunpack.i.h.bf16 %v2547_v21  ;;  %v2548_v60 = vunpack.i.l.bf16 %v2547_v21  ;;  %v4149_v38 = vperm.slane %v1327_v39, %v2950_v52  ;;  %v2494_v56 = vunpack.i.h.bf16 %v3951_v17 }
 0x195   : > { %v4153_v43 = vperm.slane %v1383_v15, %v2950_v52  ;;  %v2493_v24 = vunpack.i.l.bf16 %v3951_v17  ;;  %v1754_v50 = vrot.slane %v4124_v4, 4  ;;  %v1810_v58 = vrot.slane %v4137_v19, 4 }
 0x196   : > { %2651 = vrot.lane.b32.xlu2 %v4767_v32, %s2821_s5  ;;  %v1937_v22 = vsel %vm265_vm3, %v1936_v61, %v3792_v12  ;;  %v1410_v21 = vrot.slane %v3877_v20, 4  ;;  %v1350_v32 = vrot.slane %v4149_v38, 4  ;;  %v4171_v15 = vsel %vm265_vm3, %v3779_v13, %v2006_v27 }
 0x197   : > { %2666 = vrot.lane.b32.xlu0 %v2665_v16, %s2820_s4  ;;  %v1354_v16 = vrot.slane %v3874_v6, 4  ;;  %v1406_v6 = vrot.slane %v4153_v43, 4  ;;  %v4771_v13 = vpack.i.bf16 %v4066_v36, %v4063_v29  ;;  %v4192_v27 = vperm.slane %v1937_v22, %v2950_v52 }
 0x198   : > { %v1992_v29 = vrot.slane %v3745_v54, 4  ;;  %v1755_v36 = vsel %vm265_vm3, 0.0, %v1754_v50  ;;  %v1964_v47 = vrot.slane %v4776_v49, 4 }
 0x199   : > { %v2542_v62 = vpop.permute.xlu1 %2541  ;;  %v4181_v20 = vsel %vm265_vm3, 0.0, %v1354_v16  ;;  %v1407_v42 = vsel %vm265_vm3, 0.0, %v1406_v6  ;;  %v1408_v16 = vrot.slane %v3815_v18, 4  ;;  %v4246_v6 = vpop.permute.xlu2 %2556  ;;  %v1814_v18 = vrot.slane %v3885_v3, 4 }
 0x19a   : > { %v2544_v57 = vunpack.i.h.bf16 %v2542_v62  ;;  %v2543_v11 = vunpack.i.l.bf16 %v2542_v62  ;;  %v4770_v62 = vpack.i.bf16 %v4057_v53, %v4054_v41 }
 0x19c   : > { %v1667_v40 = vsel %vm433_vm4, %v4768_v46, %v2544_v57  ;;  %v1660_v9 = vsel %vm433_vm4, %v4769_v31, %v2543_v11  ;;  %2676 = vrot.lane.b32.xlu1 %v2675_v2, %s2823_s7  ;;  %v1960_v2 = vrot.slane %v4192_v27, 4 }
 0x19d   : > { %v1668_v39 = vsel %vm435_vm5, %v1667_v40, %v2494_v56  ;;  %v1661_v17 = vsel %vm435_vm5, %v1660_v9, %v2493_v24  ;;  %v1397_v56 = vsel %vm265_vm3, %v3766_v30, %v1396_v7  ;;  %v1811_v30 = vsel %vm265_vm3, 0.0, %v1810_v58  ;;  %v4772_v7 = vld [vmem:[#allocation29_spill] sm:$0xff] }
 0x19e   : > { %v4174_v12 = vsel %vm437_vm6, %v1661_v17, %v2548_v60  ;;  %v4177_v61 = vsel %vm437_vm6, %v1668_v39, %v2549_v48  ;;  %2671 = vrot.lane.b32.xlu2 %v4770_v62, %s2821_s5  ;;  %v4195_v48 = vsel %vm265_vm3, 0.0, %v1410_v21  ;;  %v1341_v60 = vsel %vm265_vm3, %v3678_v5, %v1340_v35 }
 0x19f   : > { %2681 = vrot.lane.b32.xlu0 %v4771_v13, %s2822_s6  ;;  %v2710_v41 = vpack.i.bf16 %v4195_v48, %v4181_v20  ;;  %v4208_v53 = vperm.slane %v1341_v60, %v2950_v52  ;;  %v4213_v5 = vperm.slane %v1397_v56, %v2950_v52  ;;  %v1351_v35 = vsel %vm265_vm3, 0.0, %v1350_v32 }
 0x1a0   : > { %v1993_v57 = vsel %vm265_vm3, %v1992_v29, %v4772_v7  ;;  %v2685_v50 = vpack.i.bf16 %v1811_v30, %v1755_v36  ;;  %v2690_v58 = vpack.i.bf16 %v1407_v42, %v1351_v35  ;;  %v1961_v31 = vsel %vm265_vm3, 0.0, %v1960_v2 }
 0x1a1   : > { %v1356_v1 = vrot.slane %v4208_v53, 4  ;;  %v2720_v54 = vpack.i.bf16 %v4213_v5, %v4208_v53  ;;  %v1412_v11 = vrot.slane %v4213_v5, 4  ;;  %v4232_v46 = vperm.slane %v1993_v57, %v2950_v52 }
 0x1a2   : > { %v1352_v9 = vrot.slane %v3822_v14, 4  ;;  %v2018_v39 = vrot.slane %v3836_v0, 4  ;;  %v1409_v32 = vsel %vm265_vm3, 0.0, %v1408_v16  ;;  %v1758_v62 = vrot.slane %v3882_v8, 4  ;;  %v4773_v0 = vld [vmem:[#allocation30_spill] sm:$0xff]  ;;  %v4774_v16 = vld [vmem:[#allocation31_spill] sm:$0xff] }
 0x1a3   : > { %v4226_v24 = vsel %vm265_vm3, 0.0, %v1356_v1  ;;  %v4229_v22 = vsel %vm265_vm3, 0.0, %v1412_v11  ;;  %v2016_v21 = vrot.slane %v4232_v46, 4  ;;  %v2474_v56 = vunpack.i.h.bf16 %v4773_v0 }
 0x1a4   : > { %v2730_v40 = vpack.i.bf16 %v4229_v22, %v4226_v24  ;;  %2025 = vrot.lane.b32.xlu1 %v1961_v31, %s2820_s4  ;;  %v1353_v17 = vsel %vm265_vm3, 0.0, %v1352_v9  ;;  %v2019_v14 = vsel %vm265_vm3, 0.0, %v2018_v39  ;;  %v2473_v29 = vunpack.i.l.bf16 %v4773_v0 }
 0x1a5   : > { %v2017_v13 = vsel %vm265_vm3, 0.0, %v2016_v21  ;;  %v2700_v60 = vpack.i.bf16 %v1409_v32, %v1353_v17  ;;  %v2519_v36 = vunpack.i.h.bf16 %v4001_v45  ;;  %v2514_v8 = vunpack.i.h.bf16 %v4011_v59  ;;  %v4775_v17 = vld [vmem:[#allocation16_spill] sm:$0xff] }
 0x1a6   : > { %2686 = vrot.lane.b32.xlu2 %v2685_v50, %s2820_s4  ;;  %v2513_v30 = vunpack.i.l.bf16 %v4011_v59  ;;  %v2518_v35 = vunpack.i.l.bf16 %v4001_v45  ;;  %v1759_v3 = vsel %vm265_vm3, 0.0, %v1758_v62  ;;  %v1815_v42 = vsel %vm265_vm3, 0.0, %v1814_v18 }
 0x1a7   : > { %2691 = vrot.lane.b32.xlu0 %v2690_v58, %s2820_s4  ;;  %v2020_v1 = vrot.slane %v3900_v55, 4  ;;  %v451_v7 = vsel %vm441_vm8, %v4025_v28, %v2514_v8  ;;  %v2705_v45 = vpack.i.bf16 %v1815_v42, %v1759_v3  ;;  %v2552_v55 = vpop.permute.xlu0 %2551  ;;  %v4276_v58 = vpop.permute.xlu2 %2581  ;;  %v1760_v28 = vrot.slane %v3905_v10, 4 }
 0x1a8   : > { %v442_v2 = vsel %vm441_vm8, %v4022_v33, %v2513_v30  ;;  %v452_v59 = vsel %vm443_vm9, %v451_v7, %v2474_v56  ;;  %v1816_v31 = vrot.slane %v3911_v44, 4  ;;  %v1962_v9 = vrot.slane %v3833_v23, 4 }
 0x1a9   : > { %v444_v57 = vsel %vm443_vm9, %v442_v2, %v2473_v29  ;;  %v4274_v50 = vsel %vm445_vm10, %v452_v59, %v2519_v36  ;;  %v2021_v33 = vsel %vm265_vm3, 0.0, %v2020_v1  ;;  %v2484_v21 = vunpack.i.h.bf16 %v4774_v16  ;;  %v4778_v59 = vld [vmem:[#allocation36_spill] sm:$0xff] }
 0x1aa   : > { %v4271_v11 = vsel %vm445_vm10, %v444_v57, %v2518_v35  ;;  %v2483_v39 = vunpack.i.l.bf16 %v4774_v16  ;;  %v2534_v32 = vunpack.i.h.bf16 %v4775_v17  ;;  %v1761_v10 = vsel %vm265_vm3, 0.0, %v1760_v28  ;;  %v4781_v16 = vld [vmem:[#allocation6_spill] sm:$0xff] }
 0x1ab   : > { %v1817_v44 = vsel %vm265_vm3, 0.0, %v1816_v31  ;;  %v2539_v23 = vunpack.i.h.bf16 %v4109_v34  ;;  %v1060_v18 = vsel %vm439_vm7, %v4090_v51, %v2484_v21  ;;  %v2538_v0 = vunpack.i.l.bf16 %v4109_v34 }
 0x1ac   : > { %2701 = vrot.lane.b32.xlu1 %v2700_v60, %s2821_s5  ;;  %v1053_v60 = vsel %vm439_vm7, %v4093_v63, %v2483_v39  ;;  %v1963_v56 = vsel %vm265_vm3, 0.0, %v1962_v9  ;;  %v1061_v36 = vsel %vm441_vm8, %v1060_v18, %v2534_v32  ;;  %v1965_v8 = vsel %vm265_vm3, 0.0, %v1964_v47  ;;  %v4784_v32 = vld [vmem:[#allocation8_spill] sm:$0xff] }
 0x1ad   : > { %v2715_v30 = vpack.i.bf16 %v1817_v44, %v1761_v10  ;;  %v2015_v1 = vperm.slane %v4171_v15, %v2950_v52  ;;  %v2499_v52 = vunpack.i.h.bf16 %v4778_v59  ;;  %v2498_v15 = vunpack.i.l.bf16 %v4778_v59 }
 0x1ae   : > { %2053 = vrot.lane.b32.xlu2 %v2017_v13, %s2820_s4  ;;  %v2533_v13 = vunpack.i.l.bf16 %v4775_v17  ;;  %v2554_v28 = vunpack.i.h.bf16 %v2552_v55  ;;  %v2553_v31 = vunpack.i.l.bf16 %v2552_v55  ;;  %v4783_v17 = vld [vmem:[#allocation9_spill] sm:$0xff]  ;;  %v2559_v18 = vunpack.i.h.bf16 %v4246_v6 }
 0x1af   : > { %2061 = vrot.lane.b32.xlu0 %v2019_v14, %s2821_s5  ;;  %v4309_v42 = vpop.permute.xlu0 %2566  ;;  %v4314_v63 = vpop.permute.xlu2 %2596  ;;  %v2022_v9 = vrot.slane %v2015_v1, 4  ;;  %v1663_v20 = vsel %vm439_vm7, %v4174_v12, %v2498_v15  ;;  %v1670_v48 = vsel %vm439_vm7, %v4177_v61, %v2499_v52  ;;  %v4785_v49 = vpack.i.bf16 %v4783_v17, %v4784_v32 }
 0x1b0   : > { %v1054_v29 = vsel %vm441_vm8, %v1053_v60, %v2533_v13  ;;  %v4324_v2 = vpop.permute.xlu1 %2561  ;;  %v4350_v53 = vsel %vm441_vm8, %v1670_v48, %v2554_v28 }
 0x1b1   : > { %v2023_v12 = vsel %vm265_vm3, 0.0, %v2022_v9  ;;  %v4786_v9 = vld [vmem:[#allocation34_spill] sm:$0xff] }
 0x1b4   : > { %2069 = vrot.lane.b32.xlu1 %v2021_v33, %s2823_s7 }
 0x1b6   : > { %2696 = vrot.lane.b32.xlu2 %v2695_v37, %s2821_s5  ;;  %v4777_v37 = vld [vmem:[#allocation32_spill] sm:$0xff] }
 0x1b7   : > { %2706 = vrot.lane.b32.xlu0 %v2705_v45, %s2823_s7  ;;  %v2489_v62 = vunpack.i.h.bf16 %v4777_v37  ;;  %v2488_v14 = vunpack.i.l.bf16 %v4777_v37  ;;  %v4779_v45 = vld [vmem:[#allocation39_spill] sm:$0xff] }
 0x1b8   : > { %v1966_v33 = vrot.slane %v4779_v45, 4  ;;  %v2572_v55 = vpop.permute.xlu1 %2571 }
 0x1b9   : > { %v1055_v35 = vsel %vm443_vm9, %v1054_v29, %v2488_v14  ;;  %v1062_v3 = vsel %vm443_vm9, %v1061_v36, %v2489_v62  ;;  %v2573_v29 = vunpack.i.l.bf16 %v2572_v55 }
 0x1ba   : > { %v4317_v51 = vsel %vm445_vm10, %v1055_v35, %v2538_v0  ;;  %v4320_v34 = vsel %vm445_vm10, %v1062_v3, %v2539_v23  ;;  %v1967_v5 = vsel %vm265_vm3, 0.0, %v1966_v33  ;;  %v2558_v0 = vunpack.i.l.bf16 %v4246_v6 }
 0x1bc   : > { %2716 = vrot.lane.b32.xlu1 %v2715_v30, %s2822_s6  ;;  %v4326_v7 = vpop.permute.xlu0 %2576 }
 0x1bd   : > { %v2579_v30 = vunpack.i.h.bf16 %v4326_v7  ;;  %v2578_v35 = vunpack.i.l.bf16 %v4326_v7  ;;  %v4788_v7 = vld [vmem:[#allocation37_spill] sm:$0xff] }
 0x1be   : > { %2033 = vrot.lane.b32.xlu2 %v1963_v56, %s2821_s5  ;;  %v2574_v56 = vunpack.i.h.bf16 %v2572_v55 }
 0x1bf   : > { %2041 = vrot.lane.b32.xlu0 %v1965_v8, %s2823_s7 }
 0x1c0   : > { %v4376_v62 = vpop.permute.xlu1 %2586 }
 0x1c4   : > { %2721 = vrot.lane.b32.xlu1 %v2720_v54, %s2817_s28  ;;  %v4780_v54 = vld [vmem:[#allocation7_spill] sm:$0xff]  ;;  %v4360_v61 = vpop.permute.xlu0 %2591 }
 0x1c5   : > { %v4337_v57 = vpop.permute.xlu2 %2606  ;;  %v4782_v21 = vpack.i.bf16 %v4780_v54, %v4781_v16 }
 0x1c6   : > { %2711 = vrot.lane.b32.xlu2 %v2710_v41, %s2823_s7  ;;  %v4347_v41 = vsel %vm441_vm8, %v1663_v20, %v2553_v31  ;;  %v4787_v20 = vld [vmem:[#allocation33_spill] sm:$0xff] }
 0x1c7   : > { %2073 = vrot.lane.b32.xlu0 %v2015_v1, %s2817_s28 }
 0x1cc   : > { %2077 = vrot.lane.b32.xlu1 %v2023_v12, %s2822_s6 }
 0x1cd   : > { %v4362_v39 = vpop.permute.xlu2 %2065 }
 0x1ce   : > { %2726 = vrot.lane.b32.xlu2 %v4782_v21, %s2817_s28  ;;  %v4789_v21 = vld [vmem:[#allocation35_spill] sm:$0xff] }
 0x1cf   : > { %2049 = vrot.lane.b32.xlu0 %v1967_v5, %s2822_s6 }
 0x1d1   : > { %v4372_v47 = vpop.permute.xlu0 %2601 }
 0x1d5   : > { %v4374_v37 = vpop.permute.xlu2 %2621 }
 0x1d6   : > { %2731 = vrot.lane.b32.xlu2 %v2730_v40, %s2822_s6 }
 0x1d7   : > { %2736 = vrot.lane.b32.xlu0 %v4785_v49, %s2822_s6 }
 0x1dc   : > { %v4382_v44 = vpop.permute.xlu1 %2057 }
 0x1dd   : > { %v4378_v13 = vpop.permute.xlu2 %2045  ;;  %v4380_v10 = vpop.permute.xlu0 %2029 }
 0x1e5   : > { %v4386_v24 = vpop.permute.xlu0 %2616 }
 0x1e6   : > { %v4388_v22 = vpop.permute.xlu1 %2611 }
 0x1e8   : > { %v4384_v14 = vpop.permute.xlu2 %2636 }
 0x1ed   : > { %v2632_v23 = vpop.permute.xlu0 %2631 }
 0x1ee   : > { %v4390_v60 = vpop.permute.xlu1 %2037  ;;  %v2634_v28 = vunpack.i.h.bf16 %v2632_v23  ;;  %v2633_v31 = vunpack.i.l.bf16 %v2632_v23 }
 0x1f0   : > { %v2652_v40 = vpop.permute.xlu2 %2651 }
 0x1f1   : > { %v2654_v52 = vunpack.i.h.bf16 %v2652_v40  ;;  %v2653_v15 = vunpack.i.l.bf16 %v2652_v40 }
 0x1f5   : > { %v2647_v8 = vpop.permute.xlu0 %2646 }
 0x1f6   : > { %v2649_v3 = vunpack.i.h.bf16 %v2647_v8  ;;  %v2648_v1 = vunpack.i.l.bf16 %v2647_v8  ;;  %v2627_v59 = vpop.permute.xlu1 %2626 }
 0x1f7   : > { %v2629_v45 = vunpack.i.h.bf16 %v2627_v59  ;;  %v2628_v33 = vunpack.i.l.bf16 %v2627_v59 }
 0x1f8   : > { %v2672_v36 = vpop.permute.xlu2 %2671  ;;  %v867_v6 = vsel %vm433_vm4, %v4786_v9, %v2649_v3  ;;  %v860_v48 = vsel %vm433_vm4, %v4787_v20, %v2648_v1  ;;  %v2588_v1 = vunpack.i.l.bf16 %v4376_v62 }
 0x1f9   : > { %v861_v5 = vsel %vm435_vm5, %v860_v48, %v2573_v29  ;;  %v868_v54 = vsel %vm435_vm5, %v867_v6, %v2574_v56  ;;  %v661_v16 = vsel %vm433_vm4, %v4788_v7, %v2629_v45  ;;  %v654_v12 = vsel %vm433_vm4, %v4789_v21, %v2628_v33 }
 0x1fa   : > { %v655_v55 = vsel %vm435_vm5, %v654_v12, %v2558_v0  ;;  %v662_v17 = vsel %vm435_vm5, %v661_v16, %v2559_v18  ;;  %v862_v32 = vsel %vm437_vm6, %v861_v5, %v2653_v15  ;;  %v869_v49 = vsel %vm437_vm6, %v868_v54, %v2654_v52 }
 0x1fb   : > { %v4411_v40 = vsel %vm437_vm6, %v655_v55, %v2633_v31  ;;  %v4414_v23 = vsel %vm437_vm6, %v662_v17, %v2634_v28  ;;  %v863_v56 = vsel %vm439_vm7, %v862_v32, %v2578_v35  ;;  %v870_v29 = vsel %vm439_vm7, %v869_v49, %v2579_v30 }
 0x1fc   : > { %v2589_v18 = vunpack.i.h.bf16 %v4376_v62  ;;  %v2594_v15 = vunpack.i.h.bf16 %v4360_v61  ;;  %v2593_v45 = vunpack.i.l.bf16 %v4360_v61  ;;  %v2674_v30 = vunpack.i.h.bf16 %v2672_v36 }
 0x1fd   : > { %v2673_v31 = vunpack.i.l.bf16 %v2672_v36  ;;  %v2604_v17 = vunpack.i.h.bf16 %v4372_v47  ;;  %v2603_v32 = vunpack.i.l.bf16 %v4372_v47 }
 0x1fe   : > { %v4420_v0 = vpop.permute.xlu1 %2641 }
 0x200   : > { %v2687_v8 = vpop.permute.xlu2 %2686 }
 0x201   : > { %v4418_v3 = vpop.permute.xlu0 %2661  ;;  %v2689_v20 = vunpack.i.h.bf16 %v2687_v8  ;;  %v2688_v48 = vunpack.i.l.bf16 %v2687_v8 }
 0x203   : > { %v1874_v55 = vsel %vm433_vm4, %v4124_v4, %v2688_v48 }
 0x206   : > { %v2657_v28 = vpop.permute.xlu1 %2656 }
 0x207   : > { %v2659_v9 = vunpack.i.h.bf16 %v2657_v28  ;;  %v2658_v6 = vunpack.i.l.bf16 %v2657_v28 }
 0x208   : > { %v4424_v59 = vpop.permute.xlu2 %2053 }
 0x209   : > { %v2667_v52 = vpop.permute.xlu0 %2666  ;;  %v4435_v61 = vsel %vm441_vm8, %v863_v56, %v2658_v6  ;;  %v4438_v16 = vsel %vm441_vm8, %v870_v29, %v2659_v9 }
 0x20a   : > { %v2669_v33 = vunpack.i.h.bf16 %v2667_v52  ;;  %v2668_v35 = vunpack.i.l.bf16 %v2667_v52  ;;  %v2613_v52 = vunpack.i.l.bf16 %v4388_v22 }
 0x20c   : > { %v1271_v5 = vsel %vm433_vm4, %v4051_v25, %v2669_v33  ;;  %v1264_v62 = vsel %vm433_vm4, %v4043_v26, %v2668_v35  ;;  %v1881_v26 = vsel %vm433_vm4, %v4137_v19, %v2689_v20  ;;  %v1875_v19 = vsel %vm435_vm5, %v1874_v55, %v2603_v32 }
 0x20d   : > { %v1265_v54 = vsel %vm435_vm5, %v1264_v62, %v2588_v1  ;;  %v1272_v7 = vsel %vm435_vm5, %v1271_v5, %v2589_v18  ;;  %v2614_v1 = vunpack.i.h.bf16 %v4388_v22  ;;  %v2618_v55 = vunpack.i.l.bf16 %v4386_v24 }
 0x20e   : > { %v1266_v36 = vsel %vm437_vm6, %v1265_v54, %v2673_v31  ;;  %v1273_v21 = vsel %vm437_vm6, %v1272_v7, %v2674_v30  ;;  %v4456_v18 = vpop.permute.xlu1 %2676  ;;  %v2563_v32 = vunpack.i.l.bf16 %v4324_v2 }
 0x20f   : > { %v4443_v12 = vsel %vm439_vm7, %v1266_v36, %v2593_v45  ;;  %v4446_v25 = vsel %vm439_vm7, %v1273_v21, %v2594_v15  ;;  %v1882_v15 = vsel %vm435_vm5, %v1881_v26, %v2604_v17  ;;  %v2569_v36 = vunpack.i.h.bf16 %v4309_v42 }
 0x210   : > { %v2697_v49 = vpop.permute.xlu2 %2696 }
 0x211   : > { %v4454_v56 = vpop.permute.xlu0 %2681  ;;  %v2699_v29 = vunpack.i.h.bf16 %v2697_v49  ;;  %v2698_v8 = vunpack.i.l.bf16 %v2697_v49 }
 0x213   : > { %v1876_v4 = vsel %vm437_vm6, %v1875_v19, %v2698_v8  ;;  %v1883_v45 = vsel %vm437_vm6, %v1882_v15, %v2699_v29  ;;  %v2639_v8 = vunpack.i.h.bf16 %v4384_v14  ;;  %v2568_v19 = vunpack.i.l.bf16 %v4309_v42 }
 0x214   : > { %v1877_v47 = vsel %vm439_vm7, %v1876_v4, %v2613_v52  ;;  %v1884_v33 = vsel %vm439_vm7, %v1883_v45, %v2614_v1  ;;  %v2638_v1 = vunpack.i.l.bf16 %v4384_v14  ;;  %v657_v15 = vsel %vm439_vm7, %v4411_v40, %v2563_v32 }
 0x215   : > { %v2643_v45 = vunpack.i.l.bf16 %v4420_v0  ;;  %v2102_v32 = vrot.slane %v4317_v51, 4  ;;  %v2103_v51 = vrot.slane %v4320_v34, 4 }
 0x216   : > { %v2026_v28 = vpop.permute.xlu1 %2025  ;;  %v658_v14 = vsel %vm441_vm8, %v657_v15, %v2638_v1  ;;  %v2664_v1 = vunpack.i.h.bf16 %v4418_v3 }
 0x217   : > { %v2080_v31 = vsel %vm433_vm4, %v4192_v27, %v2026_v28  ;;  %v2609_v27 = vunpack.i.h.bf16 %v4337_v57  ;;  %v2644_v28 = vunpack.i.h.bf16 %v4420_v0  ;;  %v659_v42 = vsel %vm443_vm9, %v658_v14, %v2568_v19 }
 0x218   : > { %v2034_v30 = vpop.permute.xlu2 %2033  ;;  %v2081_v22 = vsel %vm435_vm5, %v2080_v31, %v4380_v10  ;;  %v2608_v10 = vunpack.i.l.bf16 %v4337_v57 }
 0x219   : > { %v2692_v35 = vpop.permute.xlu0 %2691  ;;  %v2082_v20 = vsel %vm437_vm6, %v2081_v22, %v2034_v30  ;;  %v2679_v30 = vunpack.i.h.bf16 %v4456_v18 }
 0x21a   : > { %v2694_v9 = vunpack.i.h.bf16 %v2692_v35  ;;  %v2693_v6 = vunpack.i.l.bf16 %v2692_v35  ;;  %v4473_v48 = vsel %vm439_vm7, %v2082_v20, %v4390_v60  ;;  %v2619_v60 = vunpack.i.h.bf16 %v4386_v24 }
 0x21b   : > { %v2624_v20 = vunpack.i.h.bf16 %v4374_v37 }
 0x21c   : > { %v1477_v5 = vsel %vm433_vm4, %v4153_v43, %v2694_v9  ;;  %v1470_v62 = vsel %vm433_vm4, %v4149_v38, %v2693_v6  ;;  %v2564_v38 = vunpack.i.h.bf16 %v4324_v2  ;;  %v2678_v2 = vunpack.i.l.bf16 %v4456_v18 }
 0x21d   : > { %v1471_v43 = vsel %vm435_vm5, %v1470_v62, %v2608_v10  ;;  %v1478_v17 = vsel %vm435_vm5, %v1477_v5, %v2609_v27  ;;  %v2623_v5 = vunpack.i.l.bf16 %v4374_v37  ;;  %v660_v27 = vsel %vm445_vm10, %v659_v42, %v2643_v45 }
 0x21e   : > { %v2702_v7 = vpop.permute.xlu1 %2701  ;;  %v664_v4 = vsel %vm439_vm7, %v4414_v23, %v2564_v38  ;;  %v2598_v23 = vunpack.i.l.bf16 %v4314_v63  ;;  %v1268_v0 = vsel %vm441_vm8, %v4443_v12, %v2678_v2  ;;  %v1275_v10 = vsel %vm441_vm8, %v4446_v25, %v2679_v30 }
 0x21f   : > { %v2704_v21 = vunpack.i.h.bf16 %v2702_v7  ;;  %v2703_v26 = vunpack.i.l.bf16 %v2702_v7  ;;  %v665_v35 = vsel %vm441_vm8, %v664_v4, %v2639_v8  ;;  %v2599_v37 = vunpack.i.h.bf16 %v4314_v63 }
 0x220   : > { %v4490_v49 = vpop.permute.xlu2 %2711  ;;  %v666_v22 = vsel %vm443_vm9, %v665_v35, %v2569_v36  ;;  %v2096_v36 = vrot.slane %v660_v27, 4  ;;  %v2087_v2 = vsel %vm433_vm4, %v4232_v46, %v4424_v59 }
 0x221   : > { %v4479_v54 = vpop.permute.xlu0 %2061  ;;  %v1472_v57 = vsel %vm437_vm6, %v1471_v43, %v2703_v26  ;;  %v1479_v29 = vsel %vm437_vm6, %v1478_v17, %v2704_v21  ;;  %v667_v21 = vsel %vm445_vm10, %v666_v22, %v2644_v28  ;;  %v1276_v43 = vsel %vm443_vm9, %v1275_v10, %v2599_v37 }
 0x222   : > { %v4497_v24 = vsel %vm439_vm7, %v1472_v57, %v2618_v55  ;;  %v4500_v52 = vsel %vm439_vm7, %v1479_v29, %v2619_v60  ;;  %v1269_v60 = vsel %vm443_vm9, %v1268_v0, %v2598_v23  ;;  %v4541_v25 = vsel %vm2118_vm11, %v4271_v11, %v2096_v36 }
 0x223   : > { %v2663_v55 = vunpack.i.l.bf16 %v4418_v3  ;;  %v2584_v57 = vunpack.i.h.bf16 %v4276_v58  ;;  %v2129_v3 = vld [vmem:[%s4657_s2] sm:$0xff]  ;;  %v2714_v4 = vunpack.i.h.bf16 %v4490_v49  ;;  %v2713_v45 = vunpack.i.l.bf16 %v4490_v49 }
 0x224   : > { %v2088_v35 = vsel %vm435_vm5, %v2087_v2, %v4382_v44  ;;  %v2683_v44 = vunpack.i.l.bf16 %v4454_v56 }
 0x225   : > { %v1474_v59 = vsel %vm441_vm8, %v4497_v24, %v2713_v45  ;;  %v1481_v42 = vsel %vm441_vm8, %v4500_v52, %v2714_v4  ;;  %v2089_v22 = vsel %vm437_vm6, %v2088_v35, %v4479_v54 }
 0x226   : > { %v4515_v6 = vpop.permute.xlu1 %2069  ;;  %v2090_v52 = vsel %vm439_vm7, %v2089_v22, %v4362_v39  ;;  %v1270_v0 = vsel %vm445_vm10, %v1269_v60, %v2683_v44 }
 0x228   : > { %v4536_v26 = vpop.permute.xlu2 %2726 }
 0x229   : > { %v2707_v31 = vpop.permute.xlu0 %2706 }
 0x22a   : > { %v2709_v9 = vunpack.i.h.bf16 %v2707_v31  ;;  %v2708_v40 = vunpack.i.l.bf16 %v2707_v31 }
 0x22c   : > { %v1878_v18 = vsel %vm441_vm8, %v1877_v47, %v2708_v40  ;;  %v1885_v62 = vsel %vm441_vm8, %v1884_v33, %v2709_v9  ;;  %v2097_v47 = vrot.slane %v667_v21, 4  ;;  %v2583_v33 = vunpack.i.l.bf16 %v4276_v58 }
 0x22d   : > { %v4528_v7 = vsel %vm443_vm9, %v1878_v18, %v2623_v5  ;;  %v4533_v12 = vsel %vm443_vm9, %v1885_v62, %v2624_v20  ;;  %v2684_v40 = vunpack.i.h.bf16 %v4454_v56  ;;  %v2091_v18 = vsel %vm441_vm8, %v2090_v52, %v4515_v6 }
 0x22e   : > { %v4547_v63 = vsel %vm2118_vm11, %v4274_v50, %v2097_v47  ;;  %v865_v38 = vsel %vm443_vm9, %v4435_v61, %v2583_v33  ;;  %v2717_v29 = vpop.permute.xlu1 %2716  ;;  %v872_v61 = vsel %vm443_vm9, %v4438_v16, %v2584_v57  ;;  %v2824_v16 = vmov 0  }
 0x22f   : > { %v866_v8 = vsel %vm445_vm10, %v865_v38, %v2663_v55  ;;  %v873_v58 = vsel %vm445_vm10, %v872_v61, %v2664_v1  ;;  %2740 = vset.pattern.permute.xlu1 %v2824_v16  ;;  %2741 = vset.pattern.permute.xlu2 %v2824_v16  ;;  %v1277_v54 = vsel %vm445_vm10, %v1276_v43, %v2684_v40  ;;  %v2719_v37 = vunpack.i.h.bf16 %v2717_v29 }
 0x230   : > { %v4560_v19 = vsel %vm2118_vm11, %v866_v8, %v2102_v32  ;;  %v2732_v34 = vpop.permute.xlu2 %2731  ;;  %2133 = vperm.xlu1 %2740, %v2129_v3   ;;  %2742 = vset.pattern.permute.xlu0 %v2824_v16  ;;  %v2718_v47 = vunpack.i.l.bf16 %v2717_v29  ;;  %v2729_v6 = vunpack.i.h.bf16 %v4536_v26  ;;  %v2728_v33 = vunpack.i.l.bf16 %v4536_v26 }
 0x231   : > { %v2042_v17 = vpop.permute.xlu0 %2041  ;;  %v2734_v31 = vunpack.i.h.bf16 %v2732_v34  ;;  %v2733_v46 = vunpack.i.l.bf16 %v2732_v34  ;;  %v1887_v55 = vsel %vm445_vm10, %v4533_v12, %v2719_v37 }
 0x232   : > { %v2084_v11 = vsel %vm441_vm8, %v4473_v48, %v2042_v17  ;;  %v4567_v48 = vsel %vm2118_vm11, %v873_v58, %v2103_v51  ;;  %v1880_v60 = vsel %vm445_vm10, %v4528_v7, %v2718_v47  ;;  %v1665_v32 = vsel %vm443_vm9, %v4347_v41, %v2728_v33  ;;  %v2128_v41 = vld [vmem:[%s4656_s1 + $0x8] sm:$0xff] }
 0x233   : > { %v2085_v50 = vsel %vm443_vm9, %v2084_v11, %v4378_v13  ;;  %v2130_v13 = vld [vmem:[%s4657_s2 + $0x8] sm:$0xff]  ;;  %v2114_v57 = vrot.slane %v1880_v60, 4  ;;  %v1672_v11 = vsel %vm443_vm9, %v4350_v53, %v2729_v6  ;;  %v2115_v29 = vrot.slane %v1887_v55, 4  ;;  %v2127_v53 = vld [vmem:[%s4656_s1] sm:$0xff] }
 0x234   : > { %2138 = vperm.xlu2 %2741, %v2130_v13  }
 0x236   : > { %v2722_v14 = vpop.permute.xlu1 %2721 }
 0x237   : > { %v2724_v28 = vunpack.i.h.bf16 %v2722_v14  ;;  %v2723_v30 = vunpack.i.l.bf16 %v2722_v14 }
 0x239   : > { %v2074_v15 = vpop.permute.xlu0 %2073  ;;  %v1475_v49 = vsel %vm443_vm9, %v1474_v59, %v2723_v30  ;;  %v1482_v9 = vsel %vm443_vm9, %v1481_v42, %v2724_v28 }
 0x23a   : > { %v1476_v23 = vsel %vm445_vm10, %v1475_v49, %v2733_v46  ;;  %v1483_v20 = vsel %vm445_vm10, %v1482_v9, %v2734_v31  ;;  %v2092_v10 = vsel %vm443_vm9, %v2091_v18, %v2074_v15 }
 0x23b   : > { %v2108_v5 = vrot.slane %v1476_v23, 4  ;;  %v2109_v24 = vrot.slane %v1483_v20, 4 }
 0x23d   : > { %v2123_v27 = vsel %vm2118_vm11, %v1270_v0, %v2108_v5  ;;  %v2124_v56 = vsel %vm2118_vm11, %v1277_v54, %v2109_v24 }
 0x23e   : > { %v2078_v36 = vpop.permute.xlu1 %2077 }
 0x23f   : > { %v2093_v39 = vsel %vm445_vm10, %v2092_v10, %v2078_v36 }
 0x240   : > { %2288 = vmatpush.msk.msra.mxu1 %vm2118_vm11, %v2093_v39  ;;  %2300 = vmatpush.msk.msra.mxu3 %vm2118_vm11, %v2093_v39 }
 0x241   : > { %v2050_v62 = vpop.permute.xlu0 %2049 }
 0x242   : > { %v2086_v21 = vsel %vm445_vm10, %v2085_v50, %v2050_v62 }
 0x243   : > { %2285 = vmatpush.msk.msra.mxu0 %vm2118_vm11, %v2086_v21  ;;  %2295 = vmatpush.msk.msra.mxu2 %vm2118_vm11, %v2086_v21 }
 0x249   : > { %v2737_v43 = vpop.permute.xlu0 %2736 }
 0x24a   : > { %v2739_v17 = vunpack.i.h.bf16 %v2737_v43  ;;  %v2738_v38 = vunpack.i.l.bf16 %v2737_v43 }
 0x24c   : > { %v1666_v8 = vsel %vm445_vm10, %v1665_v32, %v2738_v38  ;;  %v1673_v26 = vsel %vm445_vm10, %v1672_v11, %v2739_v17 }
 0x24d   : > { %v2125_v7 = vsel %vm2118_vm11, %v1666_v8, %v2114_v57  ;;  %v2126_v1 = vsel %vm2118_vm11, %v1673_v26, %v2115_v29 }
 0x24e   : > { %2166 = vmatpush.msra.mxu0 %v2125_v7  ;;  %2296 = vmatpush.msra.mxu2 %v2125_v7 }
 0x24f   : > { %2189 = vmatpush.msra.mxu1 %v2126_v1  ;;  %2301 = vmatpush.msra.mxu3 %v2126_v1 }
 0x250   : > { %2167 = vmatpush.msra.mxu0 %v2123_v27  ;;  %2297 = vmatpush.msra.mxu2 %v2123_v27 }
 0x251   : > { %2190 = vmatpush.msra.mxu1 %v2124_v56  ;;  %2302 = vmatpush.msra.mxu3 %v2124_v56 }
 0x252   : > { %2168 = vmatpush.msra.mxu0 %v4560_v19  ;;  %2298 = vmatpush.msra.mxu2 %v4560_v19 }
 0x253   : > { %2191 = vmatpush.msra.mxu1 %v4567_v48  ;;  %2303 = vmatpush.msra.mxu3 %v4567_v48 }
 0x254   : > { %2169 = vmatpush.msra.mxu0 %v4541_v25  ;;  %2299 = vmatpush.msra.mxu2 %v4541_v25 }
 0x255   : > { %2192 = vmatpush.msra.mxu1 %v4547_v63  ;;  %2304 = vmatpush.msra.mxu3 %v4547_v63 }
 0x256   : > { %2287 = vmatmul.msk.f32.vlgmr.msra.gmra.mxu2 %vm2141_vm12, %v2128_v41  ;;  %2290 = vmatmul.msk.f32.vlgmr.msra.gmra.mxu3 %vm2141_vm12, %v2128_v41 }
 0x257   : > { %2286 = vmatmul.msk.f32.vlgmr.msra.gmra.mxu0 %vm2141_vm12, %v2127_v53  ;;  %2289 = vmatmul.msk.f32.vlgmr.msra.gmra.mxu1 %vm2141_vm12, %v2127_v53 }
 0x28e   : > { %v2139_v51 = vpop.permute.xlu2 %2138 }
 0x2a2   : > { %v2134_v12 = vpop.permute.xlu1 %2133 }
 0x2d4   : > { %v2171_v50 = vpop.f32.mrf.mxu0  ;;  %v2194_v19 = vpop.f32.mrf.mxu1 }
 0x2d5   : > { %v2172_v61 = vadd.f32 %v2171_v50, %v2134_v12  ;;  %v2195_v25 = vadd.f32 %v2194_v19, %v2134_v12 }
 0x2d7   : > { %v2200_v58 = vmax.f32 %v2172_v61, 0.0  ;;  %v2201_v48 = vmax.f32 %v2195_v25, 0.0 }
 0x2d9   : > { %2204 = vst [vmem:[%s192_s26] sm:$0xff] %v2200_v58  ;;  %v2174_v63 = vpop.f32.mrf.mxu2  ;;  %v2197_v3 = vpop.f32.mrf.mxu3 }
 0x2da   : > { %v2175_v13 = vadd.f32 %v2174_v63, %v2139_v51  ;;  %2205 = vst [vmem:[%s192_s26 + $0x8] sm:$0xff] %v2201_v48  ;;  %v2198_v2 = vadd.f32 %v2197_v3, %v2139_v51 }
 0x2dc   : > { %v2202_v16 = vmax.f32 %v2175_v13, 0.0  ;;  %v2203_v34 = vmax.f32 %v2198_v2, 0.0 }
 0x2de   : > { %2206 = vst [vmem:[%s192_s26 + $0x10] sm:$0xff] %v2202_v16 }
 0x2df   : > { %2207 = vst [vmem:[%s192_s26 + $0x18] sm:$0xff] %v2203_v34 }
 0x2e0 PF: > { %p13_p7 = scmp.ge.s32.totalorder %s2867_s17, 4   ;;  %s4790_s12 = smov %s2799_s13 }
 0x2e1   : > { %s4791_s13 = smov %s2803_s14  ;;  %s4792_s14 = smov %s2877_s20 }
 0x2e2   : > { %s4793_s15 = smov %s2867_s17  ;;  %15 = sbr.rel (!%p13_p7) target bundleno = 3 (0x3), region = 72 }
 0x2e7   :  { %2229 = vsyncpa [#allocation4], 1 }
 0x2e8   :  { %2231 = vsyncpa [#allocation4 + $0x1], 1 }

</bundles_post_ra>
